<compile_context>
chip_gen: v7x
topology: tpu7x:2x2x1
jax: 0.10.0
libtpu: 0.0.40
codegen_flags: <defaults>
</compile_context>

<pallas_src>
import jax
import jax.numpy as jnp
from jax.experimental import pallas as pl
from jax.experimental.pallas import tpu as pltpu

K_FEATURES = 12544
N_CLASSES = 10
K_CHUNK = 896  # multiple of 128; 12544 / 896 = 14 unrolled steps, ~50 live vregs/step


def linear_logsoftmax_kernel(x_ref, w_ref, b_ref, o_ref):
    # x: (B, K) f32, w: (N, K) bf16 (PyTorch-native, lane-dense), b: (1, N) f32
    B = x_ref.shape[0]
    acc = jnp.zeros((B, N_CLASSES), jnp.float32)

    # logits[b, n] = sum_k x[b, k] * w[n, k]
    # VPU broadcast-multiply + lane reduce: contracts the lane axis of BOTH
    # operands without any MXU operand transpose/relayout of the weight or x.
    for c in range(K_FEATURES // K_CHUNK):  # static -> fully unrolled
        lo = c * K_CHUNK
        xk = x_ref[:, lo:lo + K_CHUNK].astype(jnp.float32)   # (B, Kc)
        wk = w_ref[:, lo:lo + K_CHUNK].astype(jnp.float32)   # (N, Kc), f32 accumulation
        acc = acc + jnp.sum(xk[:, None, :] * wk[None, :, :], axis=-1)

    logits = acc + b_ref[...].astype(jnp.float32)            # (B, N)

    # Numerically stable log-softmax over dim=1.
    m = jnp.max(logits, axis=-1, keepdims=True)
    shifted = logits - m
    lse = jnp.log(jnp.sum(jnp.exp(shifted), axis=-1, keepdims=True))
    o_ref[...] = (shifted - lse).astype(o_ref.dtype)


def derived_model5_forward(x, w, b):
    """x: (B, 12544) f32, w: (10, 12544) (f32 or bf16, PyTorch layout), b: (1, 10).

    Returns (B, 10) log-probabilities. Accumulation is always f32 in-kernel.
    """
    B, K = x.shape
    N, Kw = w.shape
    assert K == K_FEATURES and Kw == K_FEATURES and N == N_CLASSES
    assert b.shape == (1, N)
    assert K_FEATURES % K_CHUNK == 0

    cost = pl.CostEstimate(
        flops=2 * B * N * K,
        transcendentals=B * (N + 1),                      # exp per logit + log per row
        bytes_accessed=(x.size * x.dtype.itemsize
                        + w.size * w.dtype.itemsize
                        + b.size * b.dtype.itemsize
                        + B * N * x.dtype.itemsize),
    )

    # No grid: full arrays resident in VMEM for the single kernel invocation.
    return pl.pallas_call(
        linear_logsoftmax_kernel,
        out_shape=jax.ShapeDtypeStruct((B, N), x.dtype),
        in_specs=[
            pl.BlockSpec(memory_space=pltpu.MemorySpace.VMEM),  # x  (B, K)
            pl.BlockSpec(memory_space=pltpu.MemorySpace.VMEM),  # w  (N, K) lane-dense
            pl.BlockSpec(memory_space=pltpu.MemorySpace.VMEM),  # b  (1, N)
        ],
        out_specs=pl.BlockSpec(memory_space=pltpu.MemorySpace.VMEM),
        cost_estimate=cost,
    )(x, w, b)


def reference_forward(x, w, b):
    logits = x @ w.T + b
    return jax.nn.log_softmax(logits, axis=1)


if __name__ == "__main__":
    key = jax.random.PRNGKey(0)
    kx, kw, kb = jax.random.split(key, 3)

    B = 2
    # Deterministic synthetic parameters (PyTorch nn.Linear-ish init scale).
    bound = 1.0 / (K_FEATURES ** 0.5)
    w_f32 = jax.random.uniform(kw, (N_CLASSES, K_FEATURES), jnp.float32, -bound, bound)
    b = jax.random.uniform(kb, (1, N_CLASSES), jnp.float32, -bound, bound)
    x = jax.random.normal(kx, (B, K_FEATURES), jnp.float32)

    # Weight stored bf16 in HBM once (halves the dominant weight DMA).
    w_bf16 = w_f32.astype(jnp.bfloat16)

    out = derived_model5_forward(x, w_bf16, b)
    out = jax.block_until_ready(out)

    # Reference uses the same bf16-quantized weights (upcast to f32) so the
    # comparison isolates kernel numerics: both sides accumulate in f32.
    ref = reference_forward(x, w_bf16.astype(jnp.float32), b)
    assert out.shape == (B, N_CLASSES)
    assert jnp.allclose(out, ref, atol=1e-4, rtol=1e-4), "mismatch vs reference"

    print("KERNEL_OK")
</pallas_src>

<mosaic_0001>
module attributes {stable_mosaic.version = 11 : i64} {
  func.func @linear_logsoftmax_kernel(%arg0: memref<2x12544xf32, #tpu.memory_space<vmem>>, %arg1: memref<10x12544xbf16, #tpu.memory_space<vmem>>, %arg2: memref<1x10xf32, #tpu.memory_space<vmem>>, %arg3: memref<2x10xf32, #tpu.memory_space<vmem>>) attributes {dimension_semantics = [], scalar_prefetch = 0 : i64, scratch_operands = 0 : i64, tpu.core_type = #tpu.core_type<tc>} {
    %cst = arith.constant 0.000000e+00 : f32
    %0 = vector.broadcast %cst : f32 to vector<2x10xf32>
    %c0 = arith.constant 0 : index
    %c0_0 = arith.constant 0 : index
    %1 = vector.load %arg0[%c0, %c0_0] : memref<2x12544xf32, #tpu.memory_space<vmem>>, vector<2x896xf32>
    %c0_1 = arith.constant 0 : index
    %c0_2 = arith.constant 0 : index
    %2 = vector.load %arg1[%c0_1, %c0_2] : memref<10x12544xbf16, #tpu.memory_space<vmem>>, vector<10x896xbf16>
    %3 = arith.extf %2 : vector<10x896xbf16> to vector<10x896xf32>
    %4 = vector.shape_cast %1 : vector<2x896xf32> to vector<2x1x896xf32>
    %5 = vector.shape_cast %3 : vector<10x896xf32> to vector<1x10x896xf32>
    %6 = vector.broadcast %4 : vector<2x1x896xf32> to vector<2x10x896xf32>
    %7 = vector.broadcast %5 : vector<1x10x896xf32> to vector<2x10x896xf32>
    %8 = arith.mulf %6, %7 : vector<2x10x896xf32>
    %cst_3 = arith.constant dense<0.000000e+00> : vector<2x10xf32>
    %9 = vector.multi_reduction <add>, %8, %cst_3 [2] : vector<2x10x896xf32> to vector<2x10xf32>
    %10 = arith.addf %0, %9 : vector<2x10xf32>
    %c0_4 = arith.constant 0 : index
    %c896 = arith.constant 896 : index
    %11 = vector.load %arg0[%c0_4, %c896] : memref<2x12544xf32, #tpu.memory_space<vmem>>, vector<2x896xf32>
    %c0_5 = arith.constant 0 : index
    %c896_6 = arith.constant 896 : index
    %12 = vector.load %arg1[%c0_5, %c896_6] : memref<10x12544xbf16, #tpu.memory_space<vmem>>, vector<10x896xbf16>
    %13 = arith.extf %12 : vector<10x896xbf16> to vector<10x896xf32>
    %14 = vector.shape_cast %11 : vector<2x896xf32> to vector<2x1x896xf32>
    %15 = vector.shape_cast %13 : vector<10x896xf32> to vector<1x10x896xf32>
    %16 = vector.broadcast %14 : vector<2x1x896xf32> to vector<2x10x896xf32>
    %17 = vector.broadcast %15 : vector<1x10x896xf32> to vector<2x10x896xf32>
    %18 = arith.mulf %16, %17 : vector<2x10x896xf32>
    %cst_7 = arith.constant dense<0.000000e+00> : vector<2x10xf32>
    %19 = vector.multi_reduction <add>, %18, %cst_7 [2] : vector<2x10x896xf32> to vector<2x10xf32>
    %20 = arith.addf %10, %19 : vector<2x10xf32>
    %c0_8 = arith.constant 0 : index
    %c1792 = arith.constant 1792 : index
    %21 = vector.load %arg0[%c0_8, %c1792] : memref<2x12544xf32, #tpu.memory_space<vmem>>, vector<2x896xf32>
    %c0_9 = arith.constant 0 : index
    %c1792_10 = arith.constant 1792 : index
    %22 = vector.load %arg1[%c0_9, %c1792_10] : memref<10x12544xbf16, #tpu.memory_space<vmem>>, vector<10x896xbf16>
    %23 = arith.extf %22 : vector<10x896xbf16> to vector<10x896xf32>
    %24 = vector.shape_cast %21 : vector<2x896xf32> to vector<2x1x896xf32>
    %25 = vector.shape_cast %23 : vector<10x896xf32> to vector<1x10x896xf32>
    %26 = vector.broadcast %24 : vector<2x1x896xf32> to vector<2x10x896xf32>
    %27 = vector.broadcast %25 : vector<1x10x896xf32> to vector<2x10x896xf32>
    %28 = arith.mulf %26, %27 : vector<2x10x896xf32>
    %cst_11 = arith.constant dense<0.000000e+00> : vector<2x10xf32>
    %29 = vector.multi_reduction <add>, %28, %cst_11 [2] : vector<2x10x896xf32> to vector<2x10xf32>
    %30 = arith.addf %20, %29 : vector<2x10xf32>
    %c0_12 = arith.constant 0 : index
    %c2688 = arith.constant 2688 : index
    %31 = vector.load %arg0[%c0_12, %c2688] : memref<2x12544xf32, #tpu.memory_space<vmem>>, vector<2x896xf32>
    %c0_13 = arith.constant 0 : index
    %c2688_14 = arith.constant 2688 : index
    %32 = vector.load %arg1[%c0_13, %c2688_14] : memref<10x12544xbf16, #tpu.memory_space<vmem>>, vector<10x896xbf16>
    %33 = arith.extf %32 : vector<10x896xbf16> to vector<10x896xf32>
    %34 = vector.shape_cast %31 : vector<2x896xf32> to vector<2x1x896xf32>
    %35 = vector.shape_cast %33 : vector<10x896xf32> to vector<1x10x896xf32>
    %36 = vector.broadcast %34 : vector<2x1x896xf32> to vector<2x10x896xf32>
    %37 = vector.broadcast %35 : vector<1x10x896xf32> to vector<2x10x896xf32>
    %38 = arith.mulf %36, %37 : vector<2x10x896xf32>
    %cst_15 = arith.constant dense<0.000000e+00> : vector<2x10xf32>
    %39 = vector.multi_reduction <add>, %38, %cst_15 [2] : vector<2x10x896xf32> to vector<2x10xf32>
    %40 = arith.addf %30, %39 : vector<2x10xf32>
    %c0_16 = arith.constant 0 : index
    %c3584 = arith.constant 3584 : index
    %41 = vector.load %arg0[%c0_16, %c3584] : memref<2x12544xf32, #tpu.memory_space<vmem>>, vector<2x896xf32>
    %c0_17 = arith.constant 0 : index
    %c3584_18 = arith.constant 3584 : index
    %42 = vector.load %arg1[%c0_17, %c3584_18] : memref<10x12544xbf16, #tpu.memory_space<vmem>>, vector<10x896xbf16>
    %43 = arith.extf %42 : vector<10x896xbf16> to vector<10x896xf32>
    %44 = vector.shape_cast %41 : vector<2x896xf32> to vector<2x1x896xf32>
    %45 = vector.shape_cast %43 : vector<10x896xf32> to vector<1x10x896xf32>
    %46 = vector.broadcast %44 : vector<2x1x896xf32> to vector<2x10x896xf32>
    %47 = vector.broadcast %45 : vector<1x10x896xf32> to vector<2x10x896xf32>
    %48 = arith.mulf %46, %47 : vector<2x10x896xf32>
    %cst_19 = arith.constant dense<0.000000e+00> : vector<2x10xf32>
    %49 = vector.multi_reduction <add>, %48, %cst_19 [2] : vector<2x10x896xf32> to vector<2x10xf32>
    %50 = arith.addf %40, %49 : vector<2x10xf32>
    %c0_20 = arith.constant 0 : index
    %c4480 = arith.constant 4480 : index
    %51 = vector.load %arg0[%c0_20, %c4480] : memref<2x12544xf32, #tpu.memory_space<vmem>>, vector<2x896xf32>
    %c0_21 = arith.constant 0 : index
    %c4480_22 = arith.constant 4480 : index
    %52 = vector.load %arg1[%c0_21, %c4480_22] : memref<10x12544xbf16, #tpu.memory_space<vmem>>, vector<10x896xbf16>
    %53 = arith.extf %52 : vector<10x896xbf16> to vector<10x896xf32>
    %54 = vector.shape_cast %51 : vector<2x896xf32> to vector<2x1x896xf32>
    %55 = vector.shape_cast %53 : vector<10x896xf32> to vector<1x10x896xf32>
    %56 = vector.broadcast %54 : vector<2x1x896xf32> to vector<2x10x896xf32>
    %57 = vector.broadcast %55 : vector<1x10x896xf32> to vector<2x10x896xf32>
    %58 = arith.mulf %56, %57 : vector<2x10x896xf32>
    %cst_23 = arith.constant dense<0.000000e+00> : vector<2x10xf32>
    %59 = vector.multi_reduction <add>, %58, %cst_23 [2] : vector<2x10x896xf32> to vector<2x10xf32>
    %60 = arith.addf %50, %59 : vector<2x10xf32>
    %c0_24 = arith.constant 0 : index
    %c5376 = arith.constant 5376 : index
    %61 = vector.load %arg0[%c0_24, %c5376] : memref<2x12544xf32, #tpu.memory_space<vmem>>, vector<2x896xf32>
    %c0_25 = arith.constant 0 : index
    %c5376_26 = arith.constant 5376 : index
    %62 = vector.load %arg1[%c0_25, %c5376_26] : memref<10x12544xbf16, #tpu.memory_space<vmem>>, vector<10x896xbf16>
    %63 = arith.extf %62 : vector<10x896xbf16> to vector<10x896xf32>
    %64 = vector.shape_cast %61 : vector<2x896xf32> to vector<2x1x896xf32>
    %65 = vector.shape_cast %63 : vector<10x896xf32> to vector<1x10x896xf32>
    %66 = vector.broadcast %64 : vector<2x1x896xf32> to vector<2x10x896xf32>
    %67 = vector.broadcast %65 : vector<1x10x896xf32> to vector<2x10x896xf32>
    %68 = arith.mulf %66, %67 : vector<2x10x896xf32>
    %cst_27 = arith.constant dense<0.000000e+00> : vector<2x10xf32>
    %69 = vector.multi_reduction <add>, %68, %cst_27 [2] : vector<2x10x896xf32> to vector<2x10xf32>
    %70 = arith.addf %60, %69 : vector<2x10xf32>
    %c0_28 = arith.constant 0 : index
    %c6272 = arith.constant 6272 : index
    %71 = vector.load %arg0[%c0_28, %c6272] : memref<2x12544xf32, #tpu.memory_space<vmem>>, vector<2x896xf32>
    %c0_29 = arith.constant 0 : index
    %c6272_30 = arith.constant 6272 : index
    %72 = vector.load %arg1[%c0_29, %c6272_30] : memref<10x12544xbf16, #tpu.memory_space<vmem>>, vector<10x896xbf16>
    %73 = arith.extf %72 : vector<10x896xbf16> to vector<10x896xf32>
    %74 = vector.shape_cast %71 : vector<2x896xf32> to vector<2x1x896xf32>
    %75 = vector.shape_cast %73 : vector<10x896xf32> to vector<1x10x896xf32>
    %76 = vector.broadcast %74 : vector<2x1x896xf32> to vector<2x10x896xf32>
    %77 = vector.broadcast %75 : vector<1x10x896xf32> to vector<2x10x896xf32>
    %78 = arith.mulf %76, %77 : vector<2x10x896xf32>
    %cst_31 = arith.constant dense<0.000000e+00> : vector<2x10xf32>
    %79 = vector.multi_reduction <add>, %78, %cst_31 [2] : vector<2x10x896xf32> to vector<2x10xf32>
    %80 = arith.addf %70, %79 : vector<2x10xf32>
    %c0_32 = arith.constant 0 : index
    %c7168 = arith.constant 7168 : index
    %81 = vector.load %arg0[%c0_32, %c7168] : memref<2x12544xf32, #tpu.memory_space<vmem>>, vector<2x896xf32>
    %c0_33 = arith.constant 0 : index
    %c7168_34 = arith.constant 7168 : index
    %82 = vector.load %arg1[%c0_33, %c7168_34] : memref<10x12544xbf16, #tpu.memory_space<vmem>>, vector<10x896xbf16>
    %83 = arith.extf %82 : vector<10x896xbf16> to vector<10x896xf32>
    %84 = vector.shape_cast %81 : vector<2x896xf32> to vector<2x1x896xf32>
    %85 = vector.shape_cast %83 : vector<10x896xf32> to vector<1x10x896xf32>
    %86 = vector.broadcast %84 : vector<2x1x896xf32> to vector<2x10x896xf32>
    %87 = vector.broadcast %85 : vector<1x10x896xf32> to vector<2x10x896xf32>
    %88 = arith.mulf %86, %87 : vector<2x10x896xf32>
    %cst_35 = arith.constant dense<0.000000e+00> : vector<2x10xf32>
    %89 = vector.multi_reduction <add>, %88, %cst_35 [2] : vector<2x10x896xf32> to vector<2x10xf32>
    %90 = arith.addf %80, %89 : vector<2x10xf32>
    %c0_36 = arith.constant 0 : index
    %c8064 = arith.constant 8064 : index
    %91 = vector.load %arg0[%c0_36, %c8064] : memref<2x12544xf32, #tpu.memory_space<vmem>>, vector<2x896xf32>
    %c0_37 = arith.constant 0 : index
    %c8064_38 = arith.constant 8064 : index
    %92 = vector.load %arg1[%c0_37, %c8064_38] : memref<10x12544xbf16, #tpu.memory_space<vmem>>, vector<10x896xbf16>
    %93 = arith.extf %92 : vector<10x896xbf16> to vector<10x896xf32>
    %94 = vector.shape_cast %91 : vector<2x896xf32> to vector<2x1x896xf32>
    %95 = vector.shape_cast %93 : vector<10x896xf32> to vector<1x10x896xf32>
    %96 = vector.broadcast %94 : vector<2x1x896xf32> to vector<2x10x896xf32>
    %97 = vector.broadcast %95 : vector<1x10x896xf32> to vector<2x10x896xf32>
    %98 = arith.mulf %96, %97 : vector<2x10x896xf32>
    %cst_39 = arith.constant dense<0.000000e+00> : vector<2x10xf32>
    %99 = vector.multi_reduction <add>, %98, %cst_39 [2] : vector<2x10x896xf32> to vector<2x10xf32>
    %100 = arith.addf %90, %99 : vector<2x10xf32>
    %c0_40 = arith.constant 0 : index
    %c8960 = arith.constant 8960 : index
    %101 = vector.load %arg0[%c0_40, %c8960] : memref<2x12544xf32, #tpu.memory_space<vmem>>, vector<2x896xf32>
    %c0_41 = arith.constant 0 : index
    %c8960_42 = arith.constant 8960 : index
    %102 = vector.load %arg1[%c0_41, %c8960_42] : memref<10x12544xbf16, #tpu.memory_space<vmem>>, vector<10x896xbf16>
    %103 = arith.extf %102 : vector<10x896xbf16> to vector<10x896xf32>
    %104 = vector.shape_cast %101 : vector<2x896xf32> to vector<2x1x896xf32>
    %105 = vector.shape_cast %103 : vector<10x896xf32> to vector<1x10x896xf32>
    %106 = vector.broadcast %104 : vector<2x1x896xf32> to vector<2x10x896xf32>
    %107 = vector.broadcast %105 : vector<1x10x896xf32> to vector<2x10x896xf32>
    %108 = arith.mulf %106, %107 : vector<2x10x896xf32>
    %cst_43 = arith.constant dense<0.000000e+00> : vector<2x10xf32>
    %109 = vector.multi_reduction <add>, %108, %cst_43 [2] : vector<2x10x896xf32> to vector<2x10xf32>
    %110 = arith.addf %100, %109 : vector<2x10xf32>
    %c0_44 = arith.constant 0 : index
    %c9856 = arith.constant 9856 : index
    %111 = vector.load %arg0[%c0_44, %c9856] : memref<2x12544xf32, #tpu.memory_space<vmem>>, vector<2x896xf32>
    %c0_45 = arith.constant 0 : index
    %c9856_46 = arith.constant 9856 : index
    %112 = vector.load %arg1[%c0_45, %c9856_46] : memref<10x12544xbf16, #tpu.memory_space<vmem>>, vector<10x896xbf16>
    %113 = arith.extf %112 : vector<10x896xbf16> to vector<10x896xf32>
    %114 = vector.shape_cast %111 : vector<2x896xf32> to vector<2x1x896xf32>
    %115 = vector.shape_cast %113 : vector<10x896xf32> to vector<1x10x896xf32>
    %116 = vector.broadcast %114 : vector<2x1x896xf32> to vector<2x10x896xf32>
    %117 = vector.broadcast %115 : vector<1x10x896xf32> to vector<2x10x896xf32>
    %118 = arith.mulf %116, %117 : vector<2x10x896xf32>
    %cst_47 = arith.constant dense<0.000000e+00> : vector<2x10xf32>
    %119 = vector.multi_reduction <add>, %118, %cst_47 [2] : vector<2x10x896xf32> to vector<2x10xf32>
    %120 = arith.addf %110, %119 : vector<2x10xf32>
    %c0_48 = arith.constant 0 : index
    %c10752 = arith.constant 10752 : index
    %121 = vector.load %arg0[%c0_48, %c10752] : memref<2x12544xf32, #tpu.memory_space<vmem>>, vector<2x896xf32>
    %c0_49 = arith.constant 0 : index
    %c10752_50 = arith.constant 10752 : index
    %122 = vector.load %arg1[%c0_49, %c10752_50] : memref<10x12544xbf16, #tpu.memory_space<vmem>>, vector<10x896xbf16>
    %123 = arith.extf %122 : vector<10x896xbf16> to vector<10x896xf32>
    %124 = vector.shape_cast %121 : vector<2x896xf32> to vector<2x1x896xf32>
    %125 = vector.shape_cast %123 : vector<10x896xf32> to vector<1x10x896xf32>
    %126 = vector.broadcast %124 : vector<2x1x896xf32> to vector<2x10x896xf32>
    %127 = vector.broadcast %125 : vector<1x10x896xf32> to vector<2x10x896xf32>
    %128 = arith.mulf %126, %127 : vector<2x10x896xf32>
    %cst_51 = arith.constant dense<0.000000e+00> : vector<2x10xf32>
    %129 = vector.multi_reduction <add>, %128, %cst_51 [2] : vector<2x10x896xf32> to vector<2x10xf32>
    %130 = arith.addf %120, %129 : vector<2x10xf32>
    %c0_52 = arith.constant 0 : index
    %c11648 = arith.constant 11648 : index
    %131 = vector.load %arg0[%c0_52, %c11648] : memref<2x12544xf32, #tpu.memory_space<vmem>>, vector<2x896xf32>
    %c0_53 = arith.constant 0 : index
    %c11648_54 = arith.constant 11648 : index
    %132 = vector.load %arg1[%c0_53, %c11648_54] : memref<10x12544xbf16, #tpu.memory_space<vmem>>, vector<10x896xbf16>
    %133 = arith.extf %132 : vector<10x896xbf16> to vector<10x896xf32>
    %134 = vector.shape_cast %131 : vector<2x896xf32> to vector<2x1x896xf32>
    %135 = vector.shape_cast %133 : vector<10x896xf32> to vector<1x10x896xf32>
    %136 = vector.broadcast %134 : vector<2x1x896xf32> to vector<2x10x896xf32>
    %137 = vector.broadcast %135 : vector<1x10x896xf32> to vector<2x10x896xf32>
    %138 = arith.mulf %136, %137 : vector<2x10x896xf32>
    %cst_55 = arith.constant dense<0.000000e+00> : vector<2x10xf32>
    %139 = vector.multi_reduction <add>, %138, %cst_55 [2] : vector<2x10x896xf32> to vector<2x10xf32>
    %140 = arith.addf %130, %139 : vector<2x10xf32>
    %c0_56 = arith.constant 0 : index
    %c0_57 = arith.constant 0 : index
    %141 = vector.load %arg2[%c0_56, %c0_57] : memref<1x10xf32, #tpu.memory_space<vmem>>, vector<1x10xf32>
    %142 = vector.broadcast %141 : vector<1x10xf32> to vector<2x10xf32>
    %143 = arith.addf %140, %142 : vector<2x10xf32>
    %cst_58 = arith.constant dense<0xFF800000> : vector<2xf32>
    %144 = vector.multi_reduction <maximumf>, %143, %cst_58 [1] : vector<2x10xf32> to vector<2xf32>
    %145 = vector.shape_cast %144 : vector<2xf32> to vector<2x1xf32>
    %146 = vector.broadcast %145 : vector<2x1xf32> to vector<2x10xf32>
    %147 = arith.subf %143, %146 : vector<2x10xf32>
    %148 = math.exp %147 : vector<2x10xf32>
    %cst_59 = arith.constant dense<0.000000e+00> : vector<2xf32>
    %149 = vector.multi_reduction <add>, %148, %cst_59 [1] : vector<2x10xf32> to vector<2xf32>
    %150 = vector.shape_cast %149 : vector<2xf32> to vector<2x1xf32>
    %151 = math.log %150 : vector<2x1xf32>
    %152 = vector.broadcast %151 : vector<2x1xf32> to vector<2x10xf32>
    %153 = arith.subf %147, %152 : vector<2x10xf32>
    %c0_60 = arith.constant 0 : index
    %c0_61 = arith.constant 0 : index
    %154 = vector.load %arg3[%c0_60, %c0_61] : memref<2x10xf32, #tpu.memory_space<vmem>>, vector<2x10xf32>
    tpu.vector_store %arg3[%c0_60, %c0_61], %153 {strides = array<i32>} : memref<2x10xf32, #tpu.memory_space<vmem>>, vector<2x10xf32>,
    return
  }
}

</mosaic_0001>

<bundles_post_ra>
// kernel: tpu_custom_call.1
= control target key start
LH: loop header
LB: loop body
LE: loop exit
PB: predicated region body
PF: predicated region fallthrough
CT: control target
= control target key end

     0   :  { %8 = vsyncpa [#allocation3], 0  ;;  %s4754_s0 = inlined_call_operand.hbm [shape: f32[2,12544], index: 0, kind: input, shape index: {}]   ;;  %s4755_s1 = inlined_call_operand.hbm [shape: bf16[10,12544], index: 1, kind: input, shape index: {}]   ;;  %s4756_s2 = inlined_call_operand.vmem [shape: f32[1,10], index: 2, kind: input, shape index: {}]   ;;  %s4757_s3 = inlined_call_operand.hbm [shape: f32[2,10], index: 3, kind: output, shape index: {}]  }
   0x1   :  { %9 = vsyncpa [#allocation6], 0 }
   0x2   :  { %10 = vsyncpa [#allocation4], 0  ;;  %s3017_s12 = smov [#allocation2]   ;;  %s3018_s14 = smov [#allocation5]  }
   0x3   :  { %s17_s13 = sshll.u32 %s3017_s12, 4  ;;  %s26_s15 = sshll.u32 %s3018_s14, 4  ;;  %s18_s13 = int_to_ptr.vmem [resolvable:$true] %s17_s13  ;;  %s3043_s15 = int_to_ptr.vmem [resolvable:$true] %s26_s15 }
   0x4   :  { %s2945_s18 = scalar_lea.hbm %s4754_s0, 3136 }
   0x5   :  { %p2946_p0 = scmp.ne.s32.totalorder %s4754_s0, %s2945_s18  ;;  %p2949_p1 = scmp.lt.u32.totalorder %s2945_s18, %s4754_s0 }
   0x7   :  { %p2951_p2 = pnand %p2949_p1, %p2946_p0 }
   0x9   :  { %2954 = shalt.err (!%p2951_p2)
}
   0xa   :  { %s2955_s23 = scalar_lea.vmem %s18_s13, 3136  ;;  %p2960_p4 = scmp.lt.s32.totalorder %s18_s13, %s18_s13 }
   0xb   :  { %p2956_p3 = scmp.ne.s32.totalorder %s18_s13, %s2955_s23  ;;  %p2961_p5 = scmp.lt.s32.totalorder %s2955_s23, %s2955_s23 }
   0xd   :  { %p2962_p6 = por %p2961_p5, %p2960_p4 }
   0xf   :  { %p2963_p7 = pnand %p2962_p6, %p2956_p3 }
  0x11   :  { %2966 = shalt.err (!%p2963_p7)
}
  0x12   :  { %20 = dma.hbm_to_vmem [thread:$0]  %s4754_s0, 3136, %s18_s13, [#allocation3]  }
  0x13   :  { %s2967_s28 = scalar_lea.hbm %s4755_s1, 12544 }
  0x14   :  { %p2968_p8 = scmp.ne.s32.totalorder %s4755_s1, %s2967_s28  ;;  %p2971_p9 = scmp.lt.u32.totalorder %s2967_s28, %s4755_s1 }
  0x16   :  { %p2973_p10 = pnand %p2971_p9, %p2968_p8 }
  0x18   :  { %2976 = shalt.err (!%p2973_p10)
}
  0x19   :  { %s2977_s6 = scalar_lea.vmem %s3043_s15, 12544  ;;  %p2982_p12 = scmp.lt.s32.totalorder %s3043_s15, %s3043_s15 }
  0x1a   :  { %p2978_p11 = scmp.ne.s32.totalorder %s3043_s15, %s2977_s6  ;;  %p2983_p13 = scmp.lt.s32.totalorder %s2977_s6, %s2977_s6 }
  0x1c   :  { %p2984_p0 = por %p2983_p13, %p2982_p12 }
  0x1e   :  { %p2985_p1 = pnand %p2984_p0, %p2978_p11 }
  0x20   :  { %2988 = shalt.err (!%p2985_p1)
}
  0x21   :  { %s3019_s0 = smov 6272   ;;  %s3020_s7 = smov 392  }
  0x22   :  { %32 = dma.hbm_to_vmem [thread:$0]  %s4755_s1, 12544, %s3043_s15, [#allocation6], %s3019_s0, %s3019_s0, %s3020_s7  }
  0x23   :  { %3011 = dma.done.wait [#allocation3], 3136  }
  0x24   :  { %3012 = vsyncadd [#allocation3], 4294964160 }
  0x25   :  { %3013 = dma.done.wait [#allocation6], 12544  }
  0x26   :  { %3014 = vsyncadd [#allocation6], 4294954752  ;;  %v4758_v0 = vlaneseq  ;;  %v2898_v7 = vld.sshfl [vmem:[#allocation2] sm:$0xff pattern:$0x75316420]  ;;  %v44_v9 = vld [vmem:[#allocation5 + $0x8] sm:$0xff] }
  0x27   :  { %v43_v8 = vld [vmem:[#allocation5] sm:$0xff]  ;;  %v45_v12 = vld [vmem:[#allocation5 + $0x10] sm:$0xff]  ;;  %v53_v15 = vunpack.c.l.bf16 %v44_v9  ;;  %v54_v18 = vunpack.c.h.bf16 %v44_v9  ;;  %v3100_v22 = vld [vmem:[#allocation5 + $0x188] sm:$0x11]  ;;  %vm189_vm0 = vcmask 1041408   ;;  %vm2748_vm1 = vcmask 130112  }
  0x28   :  { %v3075_v1 = vshrl.u32 %v4758_v0, 7  ;;  %v2899_v11 = vld.sshfl [vmem:[#allocation2 + $0x8] sm:$0x77 pattern:$0x75316420]  ;;  %v51_v13 = vunpack.c.l.bf16 %v43_v8  ;;  %v52_v14 = vunpack.c.h.bf16 %v43_v8  ;;  %v55_v19 = vunpack.c.l.bf16 %v45_v12 }
  0x29   :  { %v3098_v17 = vld [vmem:[#allocation5 + $0x18] ss:$28 sps:$4 sm:$0xff]   ;;  %v82_v20 = vcombine.high %v2898_v7, %v2899_v11  ;;  %v81_v21 = vcombine.low %v2898_v7, %v2899_v11  ;;  %v56_v23 = vunpack.c.h.bf16 %v45_v12  ;;  %v4765_v26 = vunpack.c.l.bf16 %v3100_v22  ;;  %v3137_v53 = vld [vmem:[#allocation5 + $0x1a0] sm:$0x1] }
  0x2a   :  { %v3078_v2 = vsub.s32 0, %v3075_v1  ;;  %v3081_v3 = vsub.s32 1, %v3075_v1  ;;  %v3084_v4 = vsub.s32 2, %v3075_v1  ;;  %v3087_v5 = vsub.s32 3, %v3075_v1  ;;  %v3103_v25 = vld [vmem:[#allocation5 + $0x190] sm:$0x11] }
  0x2b   :  { %v3090_v6 = vsub.s32 4, %v3075_v1  ;;  %v3093_v10 = vsub.s32 5, %v3075_v1  ;;  %v3096_v16 = vsub.s32 6, %v3075_v1  ;;  %v57_v24 = vunpack.c.l.bf16 %v3098_v17  ;;  %v3135_v52 = vld [vmem:[#allocation5 + $0x198] sm:$0x11] }
  0x2c   :  { %v4764_v27 = vunpack.c.h.bf16 %v3100_v22  ;;  %v114_v28 = vrot.slane %v82_v20, %v3078_v2  ;;  %v118_v29 = vrot.slane %v82_v20, %v3081_v3  ;;  %v122_v30 = vrot.slane %v82_v20, %v3084_v4 }
  0x2d   :  { %v126_v31 = vrot.slane %v82_v20, %v3087_v5  ;;  %v130_v32 = vrot.slane %v82_v20, %v3090_v6  ;;  %v134_v33 = vrot.slane %v82_v20, %v3093_v10  ;;  %v138_v34 = vrot.slane %v82_v20, %v3096_v16 }
  0x2e   :  { %v3115_v35 = vrot.slane %v81_v21, %v3078_v2  ;;  %v167_v36 = vmul.f32 %v114_v28, %v51_v13  ;;  %v168_v37 = vmul.f32 %v118_v29, %v52_v14  ;;  %v169_v38 = vmul.f32 %v122_v30, %v53_v15 }
  0x2f   :  { %v4763_v39 = vunpack.c.l.bf16 %v3103_v25  ;;  %v170_v40 = vmul.f32 %v126_v31, %v54_v18  ;;  %v171_v41 = vmul.f32 %v130_v32, %v55_v19  ;;  %v172_v42 = vmul.f32 %v134_v33, %v56_v23 }
  0x30   :  { %v3119_v43 = vrot.slane %v81_v21, %v3081_v3  ;;  %v205_v44 = vadd.f32 %v168_v37, %v167_v36  ;;  %v3122_v45 = vrot.slane %v81_v21, %v3084_v4  ;;  %v3125_v46 = vrot.slane %v81_v21, %v3087_v5 }
  0x31   :  { %v3128_v47 = vrot.slane %v81_v21, %v3090_v6  ;;  %v173_v48 = vmul.f32 %v138_v34, %v57_v24  ;;  %v3131_v49 = vrot.slane %v81_v21, %v3093_v10  ;;  %v153_v50 = vmul.f32 %v3115_v35, %v51_v13 }
  0x32   :  { %v154_v51 = vmul.f32 %v3119_v43, %v52_v14  ;;  %v206_v54 = vadd.f32 %v205_v44, %v169_v38  ;;  %v3140_v55 = vrot.slane %v81_v21, %v3096_v16  ;;  %v155_v56 = vmul.f32 %v3122_v45, %v53_v15  ;;  %v3172_v38 = vld.sshfl [vmem:[#allocation2 + $0x16] sm:$0x77 pattern:$0x75316420] }
  0x33   :  { %v156_v57 = vmul.f32 %v3125_v46, %v54_v18  ;;  %v157_v58 = vmul.f32 %v3128_v47, %v55_v19  ;;  %v158_v59 = vmul.f32 %v3131_v49, %v56_v23  ;;  %v4762_v61 = vunpack.c.h.bf16 %v3103_v25 }
  0x34   :  { %v181_v60 = vadd.f32 %v154_v51, %v153_v50  ;;  %v207_v62 = vadd.f32 %v206_v54, %v170_v40  ;;  %v4761_v63 = vunpack.c.l.bf16 %v3135_v52  ;;  %v4760_v7 = vunpack.c.h.bf16 %v3135_v52  ;;  %v3179_v50 = vld [vmem:[#allocation5 + $0x2c] sm:$0xff] }
  0x35   :  { %v4759_v8 = vunpack.c.l.bf16 %v3137_v53  ;;  %v174_v11 = vmul.f32 %v114_v28, %v4765_v26  ;;  %v175_v12 = vmul.f32 %v118_v29, %v4764_v27  ;;  %v176_v13 = vmul.f32 %v122_v30, %v4763_v39  ;;  %v3166_v29 = vld.sshfl [vmem:[#allocation2 + $0xe] sm:$0xff pattern:$0x75316420]  ;;  %v3168_v30 = vld [vmem:[#allocation5 + $0x1c] sm:$0xff] }
  0x36   :  { %v182_v9 = vadd.f32 %v181_v60, %v155_v56  ;;  %v208_v14 = vadd.f32 %v207_v62, %v171_v41  ;;  %v177_v15 = vmul.f32 %v126_v31, %v4762_v61  ;;  %v178_v18 = vmul.f32 %v130_v32, %v4761_v63  ;;  %v3183_v56 = vld [vmem:[#allocation5 + $0x1a4] sm:$0x11] }
  0x37   :  { %v179_v19 = vmul.f32 %v134_v33, %v4760_v7  ;;  %v180_v21 = vmul.f32 %v138_v34, %v4759_v8  ;;  %v213_v23 = vsel %vm189_vm0, %v174_v11, 0.0  ;;  %v214_v28 = vsel %vm189_vm0, %v175_v12, 0.0  ;;  %v3174_v33 = vld [vmem:[#allocation5 + $0x24] sm:$0xff] }
  0x38   :  { %v183_v20 = vadd.f32 %v182_v9, %v156_v57  ;;  %v209_v36 = vadd.f32 %v208_v14, %v172_v42  ;;  %v159_v31 = vmul.f32 %v3140_v55, %v57_v24  ;;  %v215_v37 = vadd.f32 %v214_v28, %v213_v23 }
  0x39   :  { %v216_v32 = vsel %vm189_vm0, %v176_v13, 0.0  ;;  %v218_v34 = vsel %vm189_vm0, %v177_v15, 0.0  ;;  %v220_v41 = vsel %vm189_vm0, %v178_v18, 0.0  ;;  %v222_v44 = vsel %vm189_vm0, %v179_v19, 0.0  ;;  %v3192_v13 = vld [vmem:[#allocation5 + $0x1ac] sm:$0x11] }
  0x3a   :  { %v184_v40 = vadd.f32 %v183_v20, %v157_v58  ;;  %v210_v51 = vadd.f32 %v209_v36, %v173_v48  ;;  %v217_v42 = vadd.f32 %v216_v32, %v215_v37  ;;  %v224_v24 = vsel %vm189_vm0, %v180_v21, 0.0  ;;  %v3203_v37 = vld [vmem:[#allocation5 + $0x1b4] sm:$0x11] }
  0x3b   :  { %v242_v54 = vunpack.c.l.bf16 %v3168_v30  ;;  %v243_v60 = vunpack.c.h.bf16 %v3168_v30  ;;  %v244_v58 = vunpack.c.l.bf16 %v3174_v33  ;;  %v245_v62 = vunpack.c.h.bf16 %v3174_v33 }
  0x3c   :  { %v185_v57 = vadd.f32 %v184_v40, %v158_v59  ;;  %211 = vadd.xlane.f32.xlu1 %v210_v51  ;;  %v219_v9 = vadd.f32 %v218_v34, %v217_v42  ;;  %v246_v11 = vunpack.c.l.bf16 %v3179_v50  ;;  %v4766_v48 = vunpack.c.h.bf16 %v3179_v50  ;;  %v3212_v42 = vld [vmem:[#allocation5 + $0x1bc] sm:$0x1] }
  0x3d   :  { %v272_v12 = vcombine.low %v3166_v29, %v3172_v38  ;;  %v248_v59 = vunpack.c.h.bf16 %v3098_v17  ;;  %v4767_v15 = vunpack.c.l.bf16 %v3183_v56  ;;  %v250_v18 = vunpack.c.h.bf16 %v3183_v56 }
  0x3e   :  { %v186_v14 = vadd.f32 %v185_v57, %v159_v31  ;;  %v221_v19 = vadd.f32 %v220_v41, %v219_v9  ;;  %v251_v32 = vunpack.c.l.bf16 %v3192_v13  ;;  %v252_v8 = vunpack.c.h.bf16 %v3192_v13  ;;  %v3280_v13 = vld [vmem:[#allocation5 + $0x48] sm:$0xff] }
  0x3f   :  { %v277_v20 = vrot.slane %v272_v12, %v3078_v2  ;;  %v281_v21 = vrot.slane %v272_v12, %v3081_v3  ;;  %v285_v23 = vrot.slane %v272_v12, %v3084_v4  ;;  %v289_v28 = vrot.slane %v272_v12, %v3087_v5 }
  0x40   :  { %187 = vadd.xlane.f32.xlu0 %v186_v14  ;;  %v293_v36 = vrot.slane %v272_v12, %v3090_v6  ;;  %v297_v31 = vrot.slane %v272_v12, %v3093_v10  ;;  %v223_v40 = vadd.f32 %v222_v44, %v221_v19  ;;  %v301_v57 = vrot.slane %v272_v12, %v3096_v16 }
  0x41   :  { %v344_v34 = vmul.f32 %v277_v20, %v242_v54  ;;  %v345_v41 = vmul.f32 %v281_v21, %v243_v60  ;;  %v346_v51 = vmul.f32 %v285_v23, %v244_v58  ;;  %v347_v9 = vmul.f32 %v289_v28, %v245_v62 }
  0x42   :  { %v348_v14 = vmul.f32 %v293_v36, %v246_v11  ;;  %v349_v44 = vmul.f32 %v297_v31, %v4766_v48  ;;  %v225_v19 = vadd.f32 %v224_v24, %v223_v40  ;;  %v253_v7 = vunpack.c.l.bf16 %v3203_v37 }
  0x43   :  { %v372_v0 = vadd.f32 %v345_v41, %v344_v34  ;;  %v254_v63 = vunpack.c.h.bf16 %v3203_v37  ;;  %v255_v61 = vunpack.c.l.bf16 %v3212_v42  ;;  %v351_v12 = vmul.f32 %v277_v20, %v4767_v15  ;;  %v3233_v42 = vld [vmem:[#allocation5 + $0x38] sm:$0xff] }
  0x44   :  { %v352_v39 = vmul.f32 %v281_v21, %v250_v18  ;;  %226 = vadd.xlane.f32.xlu1 %v225_v19  ;;  %v353_v24 = vmul.f32 %v285_v23, %v251_v32  ;;  %v354_v40 = vmul.f32 %v289_v28, %v252_v8  ;;  %v355_v34 = vmul.f32 %v293_v36, %v253_v7 }
  0x45   :  { %v373_v27 = vadd.f32 %v372_v0, %v346_v51  ;;  %v356_v41 = vmul.f32 %v297_v31, %v254_v63  ;;  %v357_v26 = vmul.f32 %v301_v57, %v255_v61  ;;  %v380_v48 = vsel %vm189_vm0, %v351_v12, 0.0 }
  0x46   :  { %v381_v37 = vsel %vm189_vm0, %v352_v39, 0.0  ;;  %v350_v20 = vmul.f32 %v301_v57, %v248_v59  ;;  %v383_v0 = vsel %vm189_vm0, %v353_v24, 0.0  ;;  %v385_v51 = vsel %vm189_vm0, %v354_v40, 0.0 }
  0x47   :  { %v374_v15 = vadd.f32 %v373_v27, %v347_v9  ;;  %v382_v21 = vadd.f32 %v381_v37, %v380_v48  ;;  %v387_v23 = vsel %vm189_vm0, %v355_v34, 0.0  ;;  %v389_v28 = vsel %vm189_vm0, %v356_v41, 0.0 }
  0x48   :  { %v273_v36 = vcombine.high %v3166_v29, %v3172_v38  ;;  %v391_v19 = vsel %vm189_vm0, %v357_v26, 0.0  ;;  %v432_v12 = vunpack.c.l.bf16 %v3233_v42  ;;  %vm2759_vm2 = vcmask 1041409  }
  0x49   :  { %v375_v31 = vadd.f32 %v374_v15, %v348_v14  ;;  %v384_v39 = vadd.f32 %v383_v0, %v382_v21  ;;  %v433_v14 = vunpack.c.h.bf16 %v3233_v42  ;;  %vm2762_vm3 = vcmask 74752  }
  0x4a   :  { %v305_v27 = vrot.slane %v273_v36, %v3078_v2  ;;  %v309_v48 = vrot.slane %v273_v36, %v3081_v3  ;;  %v313_v57 = vrot.slane %v273_v36, %v3084_v4  ;;  %v317_v9 = vrot.slane %v273_v36, %v3087_v5 }
  0x4b   :  { %v376_v24 = vadd.f32 %v375_v31, %v349_v44  ;;  %v386_v40 = vadd.f32 %v385_v51, %v384_v39  ;;  %v321_v34 = vrot.slane %v273_v36, %v3090_v6  ;;  %v325_v29 = vrot.slane %v273_v36, %v3093_v10 }
  0x4c   :  { %v358_v38 = vmul.f32 %v305_v27, %v242_v54  ;;  %v359_v26 = vmul.f32 %v309_v48, %v243_v60  ;;  %v360_v15 = vmul.f32 %v313_v57, %v244_v58  ;;  %v329_v44 = vrot.slane %v273_v36, %v3096_v16 }
  0x4d   :  { %v377_v41 = vadd.f32 %v376_v24, %v350_v20  ;;  %v388_v37 = vadd.f32 %v387_v23, %v386_v40  ;;  %v361_v21 = vmul.f32 %v317_v9, %v245_v62  ;;  %v362_v0 = vmul.f32 %v321_v34, %v246_v11  ;;  %v3271_v24 = vld.sshfl [vmem:[#allocation2 + $0x1c] sm:$0xff pattern:$0x75316420]  ;;  %v3275_v40 = vld [vmem:[#allocation5 + $0x40] sm:$0xff] }
  0x4e   :  { %v4774_v54 = vunpack.c.h.bf16 %v3179_v50  ;;  %v395_v30 = vadd.f32 %v359_v26, %v358_v38  ;;  %v4775_v60 = vunpack.c.l.bf16 %v3183_v56  ;;  %v366_v20 = vmul.f32 %v309_v48, %v250_v18  ;;  %v3273_v50 = vld.sshfl [vmem:[#allocation2 + $0x24] sm:$0x77 pattern:$0x75316420] }
  0x4f   :  { %378 = vadd.xlane.f32.xlu0 %v377_v41  ;;  %v390_v58 = vadd.f32 %v389_v28, %v388_v37  ;;  %v367_v23 = vmul.f32 %v313_v57, %v251_v32  ;;  %v368_v33 = vmul.f32 %v317_v9, %v252_v8  ;;  %v369_v36 = vmul.f32 %v321_v34, %v253_v7  ;;  %v3285_v32 = vld [vmem:[#allocation5 + $0x50] ss:$28 sps:$4 sm:$0xff]   ;;  %v3287_v48 = vld [vmem:[#allocation5 + $0x1c0] sm:$0x11] }
  0x50   :  { %v363_v51 = vmul.f32 %v325_v29, %v4774_v54  ;;  %v365_v31 = vmul.f32 %v305_v27, %v4775_v60  ;;  %v396_v62 = vadd.f32 %v395_v30, %v360_v15  ;;  %v370_v39 = vmul.f32 %v325_v29, %v254_v63  ;;  %v3293_v29 = vld [vmem:[#allocation5 + $0x1c8] sm:$0x11] }
  0x51   :  { %v371_v11 = vmul.f32 %v329_v44, %v255_v61  ;;  %v392_v27 = vadd.f32 %v391_v19, %v390_v58  ;;  %v404_v56 = vsel %vm189_vm0, %v366_v20, 0.0  ;;  %v406_v18 = vsel %vm189_vm0, %v367_v23, 0.0 }
  0x52   :  { %v403_v28 = vsel %vm189_vm0, %v365_v31, 0.0  ;;  %v364_v7 = vmul.f32 %v329_v44, %v248_v59  ;;  %v397_v63 = vadd.f32 %v396_v62, %v361_v21  ;;  %v408_v8 = vsel %vm189_vm0, %v368_v33, 0.0 }
  0x53   :  { %v405_v61 = vadd.f32 %v404_v56, %v403_v28  ;;  %393 = vadd.xlane.f32.xlu1 %v392_v27  ;;  %v410_v19 = vsel %vm189_vm0, %v369_v36, 0.0  ;;  %v412_v57 = vsel %vm189_vm0, %v370_v39, 0.0  ;;  %v414_v9 = vsel %vm189_vm0, %v371_v11, 0.0  ;;  %v3318_v28 = vld [vmem:[#allocation5 + $0x1d8] sm:$0x1] }
  0x54   :  { %v434_v34 = vunpack.c.l.bf16 %v3275_v40  ;;  %v398_v17 = vadd.f32 %v397_v63, %v362_v0  ;;  %v435_v38 = vunpack.c.h.bf16 %v3275_v40  ;;  %v4768_v26 = vunpack.c.l.bf16 %v3280_v13 }
  0x55   :  { %v407_v59 = vadd.f32 %v406_v18, %v405_v61  ;;  %v4769_v15 = vunpack.c.h.bf16 %v3280_v13  ;;  %v438_v41 = vunpack.c.l.bf16 %v3285_v32  ;;  %v462_v37 = vcombine.low %v3271_v24, %v3273_v50 }
  0x56   :  { %v439_v44 = vunpack.c.l.bf16 %v3287_v48  ;;  %v399_v21 = vadd.f32 %v398_v17, %v363_v51  ;;  %v440_v30 = vunpack.c.h.bf16 %v3287_v48  ;;  %v441_v0 = vunpack.c.l.bf16 %v3293_v29  ;;  %v3310_v51 = vld [vmem:[#allocation5 + $0x1d0] sm:$0x11] }
  0x57   :  { %v409_v54 = vadd.f32 %v408_v8, %v407_v59  ;;  %v467_v60 = vrot.slane %v462_v37, %v3078_v2  ;;  %v471_v31 = vrot.slane %v462_v37, %v3081_v3  ;;  %v475_v58 = vrot.slane %v462_v37, %v3084_v4 }
  0x58   :  { %v479_v20 = vrot.slane %v462_v37, %v3087_v5  ;;  %v400_v23 = vadd.f32 %v399_v21, %v364_v7  ;;  %v483_v62 = vrot.slane %v462_v37, %v3090_v6  ;;  %v487_v36 = vrot.slane %v462_v37, %v3093_v10 }
  0x59   :  { %v411_v33 = vadd.f32 %v410_v19, %v409_v54  ;;  %v534_v39 = vmul.f32 %v467_v60, %v432_v12  ;;  %v535_v11 = vmul.f32 %v471_v31, %v433_v14  ;;  %v536_v27 = vmul.f32 %v475_v58, %v434_v34 }
  0x5a   :  { %v442_v56 = vunpack.c.h.bf16 %v3293_v29  ;;  %401 = vadd.xlane.f32.xlu0 %v400_v23  ;;  %v491_v7 = vrot.slane %v462_v37, %v3096_v16  ;;  %v537_v63 = vmul.f32 %v479_v20, %v435_v38  ;;  %v538_v61 = vmul.f32 %v483_v62, %v4768_v26 }
  0x5b   :  { %v413_v18 = vadd.f32 %v412_v57, %v411_v33  ;;  %v539_v8 = vmul.f32 %v487_v36, %v4769_v15  ;;  %v562_v19 = vadd.f32 %v535_v11, %v534_v39  ;;  %v443_v17 = vunpack.c.l.bf16 %v3310_v51 }
  0x5c   :  { %v444_v59 = vunpack.c.h.bf16 %v3310_v51  ;;  %v445_v54 = vunpack.c.l.bf16 %v3318_v28  ;;  %v541_v57 = vmul.f32 %v467_v60, %v439_v44  ;;  %v542_v37 = vmul.f32 %v471_v31, %v440_v30  ;;  %v3339_v28 = vld [vmem:[#allocation5 + $0x54] sm:$0xff] }
  0x5d   :  { %v415_v21 = vadd.f32 %v414_v9, %v413_v18  ;;  %v563_v23 = vadd.f32 %v562_v19, %v536_v27  ;;  %v543_v33 = vmul.f32 %v475_v58, %v441_v0  ;;  %v544_v26 = vmul.f32 %v479_v20, %v442_v56 }
  0x5e   :  { %v545_v15 = vmul.f32 %v483_v62, %v443_v17  ;;  %v546_v39 = vmul.f32 %v487_v36, %v444_v59  ;;  %v547_v11 = vmul.f32 %v491_v7, %v445_v54  ;;  %v570_v51 = vsel %vm189_vm0, %v541_v57, 0.0 }
  0x5f   :  { %416 = vadd.xlane.f32.xlu1 %v415_v21  ;;  %v571_v9 = vsel %vm189_vm0, %v542_v37, 0.0  ;;  %v540_v60 = vmul.f32 %v491_v7, %v438_v41  ;;  %v564_v18 = vadd.f32 %v563_v23, %v537_v63  ;;  %v573_v27 = vsel %vm189_vm0, %v543_v33, 0.0 }
  0x60   :  { %v572_v31 = vadd.f32 %v571_v9, %v570_v51  ;;  %v575_v58 = vsel %vm189_vm0, %v544_v26, 0.0  ;;  %v577_v20 = vsel %vm189_vm0, %v545_v15, 0.0  ;;  %v579_v62 = vsel %vm189_vm0, %v546_v39, 0.0 }
  0x61   :  { %v463_v36 = vcombine.high %v3271_v24, %v3273_v50  ;;  %v565_v19 = vadd.f32 %v564_v18, %v538_v61  ;;  %v581_v57 = vsel %vm189_vm0, %v547_v11, 0.0  ;;  %v622_v37 = vunpack.c.l.bf16 %v3339_v28 }
  0x62   :  { %v574_v21 = vadd.f32 %v573_v27, %v572_v31  ;;  %v623_v51 = vunpack.c.h.bf16 %v3339_v28  ;;  %v4776_v27 = vunpack.c.l.bf16 %v3280_v13 }
  0x63   :  { %v495_v7 = vrot.slane %v463_v36, %v3078_v2  ;;  %v499_v63 = vrot.slane %v463_v36, %v3081_v3  ;;  %v503_v23 = vrot.slane %v463_v36, %v3084_v4  ;;  %v507_v26 = vrot.slane %v463_v36, %v3087_v5 }
  0x64   :  { %v566_v15 = vadd.f32 %v565_v19, %v539_v8  ;;  %v576_v33 = vadd.f32 %v575_v58, %v574_v21  ;;  %v511_v39 = vrot.slane %v463_v36, %v3090_v6  ;;  %v515_v24 = vrot.slane %v463_v36, %v3093_v10 }
  0x65   :  { %v548_v50 = vmul.f32 %v495_v7, %v432_v12  ;;  %v549_v61 = vmul.f32 %v499_v63, %v433_v14  ;;  %v550_v11 = vmul.f32 %v503_v23, %v434_v34  ;;  %v519_v8 = vrot.slane %v463_v36, %v3096_v16 }
  0x66   :  { %v567_v9 = vadd.f32 %v566_v15, %v540_v60  ;;  %v578_v18 = vadd.f32 %v577_v20, %v576_v33  ;;  %v551_v31 = vmul.f32 %v507_v26, %v435_v38  ;;  %v552_v58 = vmul.f32 %v511_v39, %v4776_v27  ;;  %v3377_v33 = vld.sshfl [vmem:[#allocation2 + $0x32] sm:$0x77 pattern:$0x75316420] }
  0x67   :  { %v4777_v12 = vunpack.c.h.bf16 %v3280_v13  ;;  %v585_v42 = vadd.f32 %v549_v61, %v548_v50  ;;  %v555_v14 = vmul.f32 %v495_v7, %v439_v44  ;;  %v556_v60 = vmul.f32 %v499_v63, %v440_v30  ;;  %v3379_v13 = vld [vmem:[#allocation5 + $0x5c] sm:$0xff]  ;;  %v3384_v30 = vld [vmem:[#allocation5 + $0x64] sm:$0xff] }
  0x68   :  { %568 = vadd.xlane.f32.xlu0 %v567_v9  ;;  %v580_v34 = vadd.f32 %v579_v62, %v578_v18  ;;  %v557_v20 = vmul.f32 %v503_v23, %v441_v0  ;;  %v558_v40 = vmul.f32 %v507_v26, %v442_v56  ;;  %v559_v36 = vmul.f32 %v511_v39, %v443_v17  ;;  %v3397_v26 = vld [vmem:[#allocation5 + $0x1e4] sm:$0x11] }
  0x69   :  { %v553_v19 = vmul.f32 %v515_v24, %v4777_v12  ;;  %v586_v38 = vadd.f32 %v585_v42, %v550_v11  ;;  %v560_v21 = vmul.f32 %v515_v24, %v444_v59  ;;  %v561_v15 = vmul.f32 %v519_v8, %v445_v54  ;;  %v3389_v59 = vld.sshfl [vmem:[#allocation2 + $0x2a] sm:$0xff pattern:$0x75316420]  ;;  %v3391_v54 = vld [vmem:[#allocation5 + $0x1dc] sm:$0x11] }
  0x6a   :  { %v582_v50 = vadd.f32 %v581_v57, %v580_v34  ;;  %v593_v44 = vsel %vm189_vm0, %v555_v14, 0.0  ;;  %v594_v62 = vsel %vm189_vm0, %v556_v60, 0.0  ;;  %v596_v48 = vsel %vm189_vm0, %v557_v20, 0.0 }
  0x6b   :  { %v554_v29 = vmul.f32 %v519_v8, %v438_v41  ;;  %v587_v0 = vadd.f32 %v586_v38, %v551_v31  ;;  %v595_v56 = vadd.f32 %v594_v62, %v593_v44  ;;  %v598_v17 = vsel %vm189_vm0, %v558_v40, 0.0  ;;  %v3422_v44 = vld [vmem:[#allocation5 + $0x1f4] sm:$0x1] }
  0x6c   :  { %583 = vadd.xlane.f32.xlu1 %v582_v50  ;;  %v600_v57 = vsel %vm189_vm0, %v559_v36, 0.0  ;;  %v602_v7 = vsel %vm189_vm0, %v560_v21, 0.0  ;;  %v604_v63 = vsel %vm189_vm0, %v561_v15, 0.0  ;;  %v624_v23 = vunpack.c.l.bf16 %v3379_v13 }
  0x6d   :  { %v588_v41 = vadd.f32 %v587_v0, %v552_v58  ;;  %v597_v39 = vadd.f32 %v596_v48, %v595_v56  ;;  %v625_v24 = vunpack.c.h.bf16 %v3379_v13  ;;  %v4772_v61 = vunpack.c.l.bf16 %v3384_v30 }
  0x6e   :  { %v4771_v11 = vunpack.c.h.bf16 %v3384_v30  ;;  %v4770_v9 = vunpack.c.h.bf16 %v3285_v32  ;;  %v652_v18 = vcombine.low %v3389_v59, %v3377_v33  ;;  %v629_v8 = vunpack.c.l.bf16 %v3391_v54 }
  0x6f   :  { %v589_v31 = vadd.f32 %v588_v41, %v553_v19  ;;  %v599_v27 = vadd.f32 %v598_v17, %v597_v39  ;;  %v630_v12 = vunpack.c.h.bf16 %v3391_v54  ;;  %v631_v58 = vunpack.c.l.bf16 %v3397_v26  ;;  %v3414_v19 = vld [vmem:[#allocation5 + $0x1ec] sm:$0x11] }
  0x70   :  { %v657_v42 = vrot.slane %v652_v18, %v3078_v2  ;;  %v661_v14 = vrot.slane %v652_v18, %v3081_v3  ;;  %v665_v34 = vrot.slane %v652_v18, %v3084_v4  ;;  %v669_v60 = vrot.slane %v652_v18, %v3087_v5 }
  0x71   :  { %v590_v20 = vadd.f32 %v589_v31, %v554_v29  ;;  %v601_v40 = vadd.f32 %v600_v57, %v599_v27  ;;  %v673_v38 = vrot.slane %v652_v18, %v3090_v6  ;;  %v677_v36 = vrot.slane %v652_v18, %v3093_v10 }
  0x72   :  { %v724_v21 = vmul.f32 %v657_v42, %v622_v37  ;;  %v725_v15 = vmul.f32 %v661_v14, %v623_v51  ;;  %v726_v50 = vmul.f32 %v665_v34, %v624_v23  ;;  %v632_v62 = vunpack.c.h.bf16 %v3397_v26 }
  0x73   :  { %591 = vadd.xlane.f32.xlu0 %v590_v20  ;;  %v603_v48 = vadd.f32 %v602_v7, %v601_v40  ;;  %v681_v29 = vrot.slane %v652_v18, %v3096_v16  ;;  %v727_v0 = vmul.f32 %v669_v60, %v625_v24  ;;  %v728_v56 = vmul.f32 %v673_v38, %v4772_v61 }
  0x74   :  { %v729_v17 = vmul.f32 %v677_v36, %v4771_v11  ;;  %v752_v57 = vadd.f32 %v725_v15, %v724_v21  ;;  %v633_v41 = vunpack.c.l.bf16 %v3414_v19  ;;  %v634_v39 = vunpack.c.h.bf16 %v3414_v19 }
  0x75   :  { %v605_v31 = vadd.f32 %v604_v63, %v603_v48  ;;  %v635_v27 = vunpack.c.l.bf16 %v3422_v44  ;;  %v731_v7 = vmul.f32 %v657_v42, %v629_v8  ;;  %v732_v18 = vmul.f32 %v661_v14, %v630_v12 }
  0x76   :  { %v753_v20 = vadd.f32 %v752_v57, %v726_v50  ;;  %v733_v40 = vmul.f32 %v665_v34, %v631_v58  ;;  %v734_v21 = vmul.f32 %v669_v60, %v632_v62  ;;  %v735_v15 = vmul.f32 %v673_v38, %v633_v41 }
  0x77   :  { %606 = vadd.xlane.f32.xlu1 %v605_v31  ;;  %v730_v63 = vmul.f32 %v681_v29, %v4770_v9  ;;  %v736_v42 = vmul.f32 %v677_v36, %v634_v39  ;;  %v760_v48 = vsel %vm189_vm0, %v731_v7, 0.0  ;;  %v761_v14 = vsel %vm189_vm0, %v732_v18, 0.0 }
  0x78   :  { %v754_v50 = vadd.f32 %v753_v20, %v727_v0  ;;  %v737_v34 = vmul.f32 %v681_v29, %v635_v27  ;;  %v762_v57 = vadd.f32 %v761_v14, %v760_v48  ;;  %v763_v60 = vsel %vm189_vm0, %v733_v40, 0.0  ;;  %v3480_v14 = vld [vmem:[#allocation5 + $0x1f8] sm:$0x11] }
  0x79   :  { %v765_v38 = vsel %vm189_vm0, %v734_v21, 0.0  ;;  %v767_v31 = vsel %vm189_vm0, %v735_v15, 0.0  ;;  %v769_v9 = vsel %vm189_vm0, %v736_v42, 0.0  ;;  %v4778_v11 = vunpack.c.l.bf16 %v3100_v22 }
  0x7a   :  { %v755_v7 = vadd.f32 %v754_v50, %v728_v56  ;;  %v764_v61 = vadd.f32 %v763_v60, %v762_v57  ;;  %v4779_v0 = vunpack.c.h.bf16 %v3100_v22  ;;  %v4780_v29 = vunpack.c.l.bf16 %v3103_v25 }
  0x7b   :  { %v160_v36 = vmul.f32 %v3115_v35, %v4778_v11  ;;  %v4781_v40 = vunpack.c.h.bf16 %v3103_v25  ;;  %v4782_v15 = vunpack.c.l.bf16 %v3135_v52  ;;  %v4783_v35 = vunpack.c.h.bf16 %v3135_v52 }
  0x7c   :  { %v161_v18 = vmul.f32 %v3119_v43, %v4779_v0  ;;  %v162_v20 = vmul.f32 %v3122_v45, %v4780_v29  ;;  %v4784_v22 = vunpack.c.l.bf16 %v3137_v53  ;;  %v756_v56 = vadd.f32 %v755_v7, %v729_v17 }
  0x7d   :  { %v163_v21 = vmul.f32 %v3125_v46, %v4781_v40  ;;  %v164_v42 = vmul.f32 %v3128_v47, %v4782_v15  ;;  %v165_v11 = vmul.f32 %v3131_v49, %v4783_v35  ;;  %v766_v48 = vadd.f32 %v765_v38, %v764_v61  ;;  %v3485_v49 = vld [vmem:[#allocation5 + $0x200] sm:$0x11] }
  0x7e   :  { %v166_v43 = vmul.f32 %v3140_v55, %v4784_v22  ;;  %v190_v45 = vsel %vm189_vm0, %v160_v36, 0.0  ;;  %v191_v25 = vsel %vm189_vm0, %v161_v18, 0.0  ;;  %v771_v46 = vsel %vm189_vm0, %v737_v34, 0.0 }
  0x7f   :  { %v192_v50 = vadd.f32 %v191_v25, %v190_v45  ;;  %v193_v47 = vsel %vm189_vm0, %v162_v20, 0.0  ;;  %v195_v52 = vsel %vm189_vm0, %v163_v21, 0.0  ;;  %v757_v53 = vadd.f32 %v756_v56, %v730_v63 }
  0x80   :  { %v768_v57 = vadd.f32 %v767_v31, %v766_v48  ;;  %v197_v55 = vsel %vm189_vm0, %v164_v42, 0.0  ;;  %v199_v61 = vsel %vm189_vm0, %v165_v11, 0.0  ;;  %v201_v60 = vsel %vm189_vm0, %v166_v43, 0.0  ;;  %v3507_v11 = vld [vmem:[#allocation5 + $0x208] sm:$0x11] }
  0x81   :  { %v194_v17 = vadd.f32 %v193_v47, %v192_v50  ;;  %v653_v38 = vcombine.high %v3389_v59, %v3377_v33  ;;  %v819_v34 = vunpack.c.l.bf16 %v3480_v14  ;;  %758 = vadd.xlane.f32.xlu0 %v757_v53  ;;  %v820_v7 = vunpack.c.h.bf16 %v3480_v14 }
  0x82   :  { %v770_v36 = vadd.f32 %v769_v9, %v768_v57  ;;  %v821_v0 = vunpack.c.l.bf16 %v3485_v49  ;;  %v822_v63 = vunpack.c.h.bf16 %v3485_v49  ;;  %v3537_v57 = vld [vmem:[#allocation5 + $0x210] sm:$0x1] }
  0x83   :  { %v196_v31 = vadd.f32 %v195_v52, %v194_v17  ;;  %v685_v18 = vrot.slane %v653_v38, %v3078_v2  ;;  %v689_v29 = vrot.slane %v653_v38, %v3081_v3  ;;  %v693_v20 = vrot.slane %v653_v38, %v3084_v4 }
  0x84   :  { %v772_v40 = vadd.f32 %v771_v46, %v770_v36  ;;  %v697_v33 = vrot.slane %v653_v38, %v3087_v5  ;;  %v701_v59 = vrot.slane %v653_v38, %v3090_v6  ;;  %v705_v9 = vrot.slane %v653_v38, %v3093_v10 }
  0x85   :  { %v198_v21 = vadd.f32 %v197_v55, %v196_v31  ;;  %v709_v15 = vrot.slane %v653_v38, %v3096_v16  ;;  %v745_v42 = vmul.f32 %v685_v18, %v629_v8  ;;  %v746_v35 = vmul.f32 %v689_v29, %v630_v12  ;;  %v3539_v55 = vld [vmem:[#allocation5 + $0x70] sm:$0xff] }
  0x86   :  { %773 = vadd.xlane.f32.xlu1 %v772_v40  ;;  %v747_v22 = vmul.f32 %v693_v20, %v631_v58  ;;  %v748_v43 = vmul.f32 %v697_v33, %v632_v62  ;;  %v749_v56 = vmul.f32 %v701_v59, %v633_v41  ;;  %v750_v48 = vmul.f32 %v705_v9, %v634_v39  ;;  %v3523_v62 = vld.sshfl [vmem:[#allocation2 + $0x38] sm:$0xff pattern:$0x75316420] }
  0x87   :  { %v200_v45 = vadd.f32 %v199_v61, %v198_v21  ;;  %v751_v54 = vmul.f32 %v709_v15, %v635_v27  ;;  %v783_v8 = vsel %vm189_vm0, %v745_v42, 0.0  ;;  %v784_v12 = vsel %vm189_vm0, %v746_v35, 0.0  ;;  %v3530_v27 = vld.sshfl [vmem:[#allocation2 + $0x40] sm:$0x77 pattern:$0x75316420] }
  0x88   :  { %v785_v25 = vadd.f32 %v784_v12, %v783_v8  ;;  %v786_v58 = vsel %vm189_vm0, %v747_v22, 0.0  ;;  %v788_v26 = vsel %vm189_vm0, %v748_v43, 0.0  ;;  %v823_v41 = vunpack.c.l.bf16 %v3507_v11  ;;  %v3541_v61 = vld [vmem:[#allocation5 + $0x78] sm:$0xff] }
  0x89   :  { %v202_v46 = vadd.f32 %v201_v60, %v200_v45  ;;  %v790_v19 = vsel %vm189_vm0, %v749_v56, 0.0  ;;  %v792_v39 = vsel %vm189_vm0, %v750_v48, 0.0  ;;  %v738_v44 = vmul.f32 %v685_v18, %v622_v37 }
  0x8a   :  { %v787_v50 = vadd.f32 %v786_v58, %v785_v25  ;;  %v794_v47 = vsel %vm189_vm0, %v751_v54, 0.0  ;;  %v739_v52 = vmul.f32 %v689_v29, %v623_v51  ;;  %v740_v53 = vmul.f32 %v693_v20, %v624_v23 }
  0x8b   :  { %203 = vadd.xlane.f32.xlu0 %v202_v46  ;;  %v741_v37 = vmul.f32 %v697_v33, %v625_v24  ;;  %v4785_v17 = vunpack.c.l.bf16 %v3384_v30  ;;  %v4786_v38 = vunpack.c.h.bf16 %v3384_v30  ;;  %v4787_v51 = vunpack.c.h.bf16 %v3285_v32  ;;  %v3579_v46 = vld [vmem:[#allocation5 + $0x88] ss:$28 sps:$4 sm:$0xff]  }
  0x8c   :  { %v789_v23 = vadd.f32 %v788_v26, %v787_v50  ;;  %v775_v31 = vadd.f32 %v739_v52, %v738_v44  ;;  %v824_v18 = vunpack.c.h.bf16 %v3507_v11  ;;  %v842_v29 = vcombine.low %v3523_v62, %v3530_v27  ;;  %v3577_v26 = vld [vmem:[#allocation5 + $0x80] sm:$0xff]  ;;  %v3644_v11 = vld.sshfl [vmem:[#allocation2 + $0x4e] sm:$0x77 pattern:$0x75316420] }
  0x8d   :  { %v742_v60 = vmul.f32 %v701_v59, %v4785_v17  ;;  %v743_v28 = vmul.f32 %v705_v9, %v4786_v38  ;;  %v744_v36 = vmul.f32 %v709_v15, %v4787_v51  ;;  %v825_v20 = vunpack.c.l.bf16 %v3537_v57 }
  0x8e   :  { %v812_v13 = vunpack.c.l.bf16 %v3539_v55  ;;  %v813_v24 = vunpack.c.h.bf16 %v3539_v55  ;;  %v814_v40 = vunpack.c.l.bf16 %v3541_v61  ;;  %v791_v30 = vadd.f32 %v790_v19, %v789_v23 }
  0x8f   :  { %v776_v33 = vadd.f32 %v775_v31, %v740_v53  ;;  %v847_v32 = vrot.slane %v842_v29, %v3078_v2  ;;  %v851_v59 = vrot.slane %v842_v29, %v3081_v3  ;;  %v855_v9 = vrot.slane %v842_v29, %v3084_v4 }
  0x90   :  { %v859_v21 = vrot.slane %v842_v29, %v3087_v5  ;;  %v863_v15 = vrot.slane %v842_v29, %v3090_v6  ;;  %v867_v42 = vrot.slane %v842_v29, %v3093_v10  ;;  %v793_v35 = vadd.f32 %v792_v39, %v791_v30 }
  0x91   :  { %v777_v22 = vadd.f32 %v776_v33, %v741_v37  ;;  %v871_v43 = vrot.slane %v842_v29, %v3096_v16  ;;  %v921_v56 = vmul.f32 %v847_v32, %v819_v34  ;;  %v922_v48 = vmul.f32 %v851_v59, %v820_v7  ;;  %v3597_v33 = vld [vmem:[#allocation5 + $0x214] sm:$0x11] }
  0x92   :  { %v923_v45 = vmul.f32 %v855_v9, %v821_v0  ;;  %v924_v54 = vmul.f32 %v859_v21, %v822_v63  ;;  %v925_v8 = vmul.f32 %v863_v15, %v823_v41  ;;  %v795_v12 = vadd.f32 %v794_v47, %v793_v35  ;;  %v3599_v35 = vld [vmem:[#allocation5 + $0x21c] sm:$0x11] }
  0x93   :  { %v778_v25 = vadd.f32 %v777_v22, %v742_v60  ;;  %v926_v58 = vmul.f32 %v867_v42, %v824_v18  ;;  %v815_v19 = vunpack.c.h.bf16 %v3541_v61  ;;  %v927_v39 = vmul.f32 %v871_v43, %v825_v20 }
  0x94   :  { %v950_v44 = vsel %vm189_vm0, %v921_v56, 0.0  ;;  %v951_v50 = vsel %vm189_vm0, %v922_v48, 0.0  ;;  %v953_v52 = vsel %vm189_vm0, %v923_v45, 0.0  ;;  %796 = vadd.xlane.f32.xlu1 %v795_v12  ;;  %v955_v37 = vsel %vm189_vm0, %v924_v54, 0.0 }
  0x95   :  { %v779_v47 = vadd.f32 %v778_v25, %v743_v28  ;;  %v952_v53 = vadd.f32 %v951_v50, %v950_v44  ;;  %v957_v17 = vsel %vm189_vm0, %v925_v8, 0.0  ;;  %v959_v60 = vsel %vm189_vm0, %v926_v58, 0.0 }
  0x96   :  { %v816_v38 = vunpack.c.l.bf16 %v3577_v26  ;;  %v817_v51 = vunpack.c.h.bf16 %v3577_v26  ;;  %v818_v23 = vunpack.c.l.bf16 %v3579_v46  ;;  %v914_v30 = vmul.f32 %v847_v32, %v812_v13 }
  0x97   :  { %v780_v31 = vadd.f32 %v779_v47, %v744_v36  ;;  %v954_v29 = vadd.f32 %v953_v52, %v952_v53  ;;  %v915_v28 = vmul.f32 %v851_v59, %v813_v24  ;;  %v961_v22 = vsel %vm189_vm0, %v927_v39, 0.0 }
  0x98   :  { %v916_v56 = vmul.f32 %v855_v9, %v814_v40  ;;  %v917_v48 = vmul.f32 %v859_v21, %v815_v19  ;;  %v918_v36 = vmul.f32 %v863_v15, %v816_v38  ;;  %v919_v59 = vmul.f32 %v867_v42, %v817_v51 }
  0x99   :  { %781 = vadd.xlane.f32.xlu0 %v780_v31  ;;  %v956_v32 = vadd.f32 %v955_v37, %v954_v29  ;;  %v942_v45 = vadd.f32 %v915_v28, %v914_v30  ;;  %v843_v54 = vcombine.high %v3523_v62, %v3530_v27  ;;  %v920_v8 = vmul.f32 %v871_v43, %v818_v23 }
  0x9a   :  { %v1009_v9 = vunpack.c.l.bf16 %v3597_v33  ;;  %v1010_v12 = vunpack.c.h.bf16 %v3597_v33  ;;  %v1011_v21 = vunpack.c.l.bf16 %v3599_v35  ;;  %v1012_v49 = vunpack.c.h.bf16 %v3599_v35 }
  0x9b   :  { %v958_v25 = vadd.f32 %v957_v17, %v956_v32  ;;  %v943_v15 = vadd.f32 %v942_v45, %v916_v56  ;;  %v875_v58 = vrot.slane %v843_v54, %v3078_v2  ;;  %v879_v39 = vrot.slane %v843_v54, %v3081_v3 }
  0x9c   :  { %v883_v42 = vrot.slane %v843_v54, %v3084_v4  ;;  %v887_v44 = vrot.slane %v843_v54, %v3087_v5  ;;  %v891_v62 = vrot.slane %v843_v54, %v3090_v6  ;;  %v895_v27 = vrot.slane %v843_v54, %v3093_v10 }
  0x9d   :  { %v960_v43 = vadd.f32 %v959_v60, %v958_v25  ;;  %v944_v50 = vadd.f32 %v943_v15, %v917_v48  ;;  %v899_v52 = vrot.slane %v843_v54, %v3096_v16  ;;  %v935_v47 = vmul.f32 %v875_v58, %v819_v34  ;;  %v3653_v48 = vld.sshfl [vmem:[#allocation2 + $0x46] sm:$0xff pattern:$0x75316420]  ;;  %v3660_v25 = vld [vmem:[#allocation5 + $0x22c] sm:$0x1] }
  0x9e   :  { %v936_v53 = vmul.f32 %v879_v39, %v820_v7  ;;  %v937_v37 = vmul.f32 %v883_v42, %v821_v0  ;;  %v938_v17 = vmul.f32 %v887_v44, %v822_v63  ;;  %v939_v31 = vmul.f32 %v891_v62, %v823_v41 }
  0x9f   :  { %v962_v29 = vadd.f32 %v961_v22, %v960_v43  ;;  %v945_v60 = vadd.f32 %v944_v50, %v918_v36  ;;  %v940_v30 = vmul.f32 %v895_v27, %v824_v18  ;;  %v941_v34 = vmul.f32 %v899_v52, %v825_v20  ;;  %v3655_v36 = vld [vmem:[#allocation5 + $0x224] sm:$0x11] }
  0xa0   :  { %v973_v14 = vsel %vm189_vm0, %v935_v47, 0.0  ;;  %v974_v7 = vsel %vm189_vm0, %v936_v53, 0.0  ;;  %v976_v0 = vsel %vm189_vm0, %v937_v37, 0.0  ;;  %v978_v41 = vsel %vm189_vm0, %v938_v17, 0.0  ;;  %v3683_v47 = vld [vmem:[#allocation5 + $0x94] sm:$0xff] }
  0xa1   :  { %963 = vadd.xlane.f32.xlu1 %v962_v29  ;;  %v946_v63 = vadd.f32 %v945_v60, %v919_v59  ;;  %v975_v28 = vadd.f32 %v974_v7, %v973_v14  ;;  %v980_v22 = vsel %vm189_vm0, %v939_v31, 0.0  ;;  %v982_v57 = vsel %vm189_vm0, %v940_v30, 0.0 }
  0xa2   :  { %v928_v18 = vmul.f32 %v875_v58, %v812_v13  ;;  %v929_v20 = vmul.f32 %v879_v39, %v813_v24  ;;  %v930_v56 = vmul.f32 %v883_v42, %v814_v40  ;;  %v984_v45 = vsel %vm189_vm0, %v941_v34, 0.0  ;;  %v3662_v13 = vld [vmem:[#allocation5 + $0x8c] sm:$0xff] }
  0xa3   :  { %v947_v32 = vadd.f32 %v946_v63, %v920_v8  ;;  %v977_v59 = vadd.f32 %v976_v0, %v975_v28  ;;  %v931_v54 = vmul.f32 %v887_v44, %v815_v19  ;;  %v932_v55 = vmul.f32 %v891_v62, %v816_v38  ;;  %v3699_v63 = vld [vmem:[#allocation5 + $0x9c] sm:$0xff] }
  0xa4   :  { %v933_v24 = vmul.f32 %v895_v27, %v817_v51  ;;  %v934_v40 = vmul.f32 %v899_v52, %v818_v23  ;;  %v965_v8 = vadd.f32 %v929_v20, %v928_v18  ;;  %v1013_v58 = vunpack.c.l.bf16 %v3655_v36 }
  0xa5   :  { %948 = vadd.xlane.f32.xlu0 %v947_v32  ;;  %v979_v15 = vadd.f32 %v978_v41, %v977_v59  ;;  %v1014_v61 = vunpack.c.h.bf16 %v3655_v36  ;;  %v1032_v19 = vcombine.low %v3653_v48, %v3644_v11  ;;  %v1015_v42 = vunpack.c.l.bf16 %v3660_v25  ;;  %v3760_v36 = vld.sshfl [vmem:[#allocation2 + $0x5c] sm:$0x77 pattern:$0x75316420] }
  0xa6   :  { %v966_v39 = vadd.f32 %v965_v8, %v930_v56  ;;  %v1002_v38 = vunpack.c.l.bf16 %v3662_v13  ;;  %v1003_v26 = vunpack.c.h.bf16 %v3662_v13  ;;  %v1004_v28 = vunpack.c.l.bf16 %v3683_v47 }
  0xa7   :  { %v981_v51 = vadd.f32 %v980_v22, %v979_v15  ;;  %v1037_v23 = vrot.slane %v1032_v19, %v3078_v2  ;;  %v1041_v44 = vrot.slane %v1032_v19, %v3081_v3  ;;  %v1045_v62 = vrot.slane %v1032_v19, %v3084_v4 }
  0xa8   :  { %v967_v27 = vadd.f32 %v966_v39, %v931_v54  ;;  %v1049_v43 = vrot.slane %v1032_v19, %v3087_v5  ;;  %v1053_v50 = vrot.slane %v1032_v19, %v3090_v6  ;;  %v1057_v52 = vrot.slane %v1032_v19, %v3093_v10 }
  0xa9   :  { %v983_v53 = vadd.f32 %v982_v57, %v981_v51  ;;  %v1061_v37 = vrot.slane %v1032_v19, %v3096_v16  ;;  %v1111_v17 = vmul.f32 %v1037_v23, %v1009_v9  ;;  %v1112_v31 = vmul.f32 %v1041_v44, %v1010_v12  ;;  %v3717_v51 = vld [vmem:[#allocation5 + $0x230] sm:$0x11] }
  0xaa   :  { %v968_v29 = vadd.f32 %v967_v27, %v932_v55  ;;  %v1113_v60 = vmul.f32 %v1045_v62, %v1011_v21  ;;  %v1114_v30 = vmul.f32 %v1049_v43, %v1012_v49  ;;  %v1115_v34 = vmul.f32 %v1053_v50, %v1013_v58  ;;  %v3719_v27 = vld [vmem:[#allocation5 + $0x238] sm:$0x11] }
  0xab   :  { %v985_v14 = vadd.f32 %v984_v45, %v983_v53  ;;  %v1116_v7 = vmul.f32 %v1057_v52, %v1014_v61  ;;  %v1140_v0 = vsel %vm189_vm0, %v1111_v17, 0.0  ;;  %v1117_v22 = vmul.f32 %v1061_v37, %v1015_v42 }
  0xac   :  { %v969_v41 = vadd.f32 %v968_v29, %v933_v24  ;;  %v1141_v57 = vsel %vm189_vm0, %v1112_v31, 0.0  ;;  %v1143_v18 = vsel %vm189_vm0, %v1113_v60, 0.0  ;;  %v1145_v56 = vsel %vm189_vm0, %v1114_v30, 0.0 }
  0xad   :  { %986 = vadd.xlane.f32.xlu1 %v985_v14  ;;  %v1142_v20 = vadd.f32 %v1141_v57, %v1140_v0  ;;  %v1147_v32 = vsel %vm189_vm0, %v1115_v34, 0.0  ;;  %v1149_v59 = vsel %vm189_vm0, %v1116_v7, 0.0  ;;  %v1005_v54 = vunpack.c.h.bf16 %v3683_v47 }
  0xae   :  { %v970_v45 = vadd.f32 %v969_v41, %v934_v40  ;;  %v1006_v55 = vunpack.c.l.bf16 %v3699_v63  ;;  %v1007_v24 = vunpack.c.h.bf16 %v3699_v63  ;;  %v1008_v15 = vunpack.c.h.bf16 %v3579_v46 }
  0xaf   :  { %v1144_v8 = vadd.f32 %v1143_v18, %v1142_v20  ;;  %v1104_v19 = vmul.f32 %v1037_v23, %v1002_v38  ;;  %v1105_v39 = vmul.f32 %v1041_v44, %v1003_v26  ;;  %v1151_v40 = vsel %vm189_vm0, %v1117_v22, 0.0 }
  0xb0   :  { %971 = vadd.xlane.f32.xlu0 %v970_v45  ;;  %v1106_v53 = vmul.f32 %v1045_v62, %v1004_v28  ;;  %v1107_v17 = vmul.f32 %v1049_v43, %v1005_v54  ;;  %v1108_v46 = vmul.f32 %v1053_v50, %v1006_v55  ;;  %v1109_v23 = vmul.f32 %v1057_v52, %v1007_v24 }
  0xb1   :  { %v1146_v31 = vadd.f32 %v1145_v56, %v1144_v8  ;;  %v1132_v29 = vadd.f32 %v1105_v39, %v1104_v19  ;;  %v1033_v44 = vcombine.high %v3653_v48, %v3644_v11  ;;  %v1110_v60 = vmul.f32 %v1061_v37, %v1008_v15 }
  0xb2   :  { %v1199_v30 = vunpack.c.l.bf16 %v3717_v51  ;;  %v1200_v34 = vunpack.c.h.bf16 %v3717_v51  ;;  %v1201_v14 = vunpack.c.l.bf16 %v3719_v27  ;;  %v1202_v35 = vunpack.c.h.bf16 %v3719_v27 }
  0xb3   :  { %v1148_v62 = vadd.f32 %v1147_v32, %v1146_v31  ;;  %v1133_v43 = vadd.f32 %v1132_v29, %v1106_v53  ;;  %v1065_v7 = vrot.slane %v1033_v44, %v3078_v2  ;;  %v1069_v50 = vrot.slane %v1033_v44, %v3081_v3  ;;  %v3769_v53 = vld.sshfl [vmem:[#allocation2 + $0x54] sm:$0xff pattern:$0x75316420] }
  0xb4   :  { %v1073_v0 = vrot.slane %v1033_v44, %v3084_v4  ;;  %v1077_v52 = vrot.slane %v1033_v44, %v3087_v5  ;;  %v1081_v41 = vrot.slane %v1033_v44, %v3090_v6  ;;  %v1085_v11 = vrot.slane %v1033_v44, %v3093_v10 }
  0xb5   :  { %v1150_v48 = vadd.f32 %v1149_v59, %v1148_v62  ;;  %v1134_v37 = vadd.f32 %v1133_v43, %v1107_v17  ;;  %v1089_v22 = vrot.slane %v1033_v44, %v3096_v16  ;;  %v1125_v57 = vmul.f32 %v1065_v7, %v1009_v9  ;;  %v3771_v17 = vld [vmem:[#allocation5 + $0x240] sm:$0x11]  ;;  %v3774_v44 = vld [vmem:[#allocation5 + $0x248] sm:$0x1] }
  0xb6   :  { %v1126_v18 = vmul.f32 %v1069_v50, %v1010_v12  ;;  %v1127_v20 = vmul.f32 %v1073_v0, %v1011_v21  ;;  %v1128_v56 = vmul.f32 %v1077_v52, %v1012_v49  ;;  %v1129_v32 = vmul.f32 %v1081_v41, %v1013_v58  ;;  %v3776_v62 = vld [vmem:[#allocation5 + $0xa8] sm:$0xff] }
  0xb7   :  { %v1152_v45 = vadd.f32 %v1151_v40, %v1150_v48  ;;  %v1135_v59 = vadd.f32 %v1134_v37, %v1108_v46  ;;  %v1130_v8 = vmul.f32 %v1085_v11, %v1014_v61  ;;  %v1131_v9 = vmul.f32 %v1089_v22, %v1015_v42 }
  0xb8   :  { %v1163_v33 = vsel %vm189_vm0, %v1125_v57, 0.0  ;;  %v1164_v12 = vsel %vm189_vm0, %v1126_v18, 0.0  ;;  %v1166_v21 = vsel %vm189_vm0, %v1127_v20, 0.0  ;;  %v1168_v58 = vsel %vm189_vm0, %v1128_v56, 0.0 }
  0xb9   :  { %1153 = vadd.xlane.f32.xlu1 %v1152_v45  ;;  %v1136_v49 = vadd.f32 %v1135_v59, %v1109_v23  ;;  %v1165_v19 = vadd.f32 %v1164_v12, %v1163_v33  ;;  %v1170_v39 = vsel %vm189_vm0, %v1129_v32, 0.0  ;;  %v1172_v25 = vsel %vm189_vm0, %v1130_v8, 0.0 }
  0xba   :  { %v1118_v61 = vmul.f32 %v1065_v7, %v1002_v38  ;;  %v1119_v42 = vmul.f32 %v1069_v50, %v1003_v26  ;;  %v1120_v40 = vmul.f32 %v1073_v0, %v1004_v28  ;;  %v1174_v23 = vsel %vm189_vm0, %v1131_v9, 0.0 }
  0xbb   :  { %v1137_v46 = vadd.f32 %v1136_v49, %v1110_v60  ;;  %v1167_v31 = vadd.f32 %v1166_v21, %v1165_v19  ;;  %v1121_v29 = vmul.f32 %v1077_v52, %v1005_v54  ;;  %v1122_v13 = vmul.f32 %v1081_v41, %v1006_v55  ;;  %v3811_v21 = vld [vmem:[#allocation5 + $0xb8] sm:$0xff] }
  0xbc   :  { %v1123_v38 = vmul.f32 %v1085_v11, %v1007_v24  ;;  %v1124_v26 = vmul.f32 %v1089_v22, %v1008_v15  ;;  %v1155_v47 = vadd.f32 %v1119_v42, %v1118_v61  ;;  %v1203_v60 = vunpack.c.l.bf16 %v3771_v17  ;;  %v3795_v22 = vld [vmem:[#allocation5 + $0xb0] sm:$0xff]  ;;  %v3818_v61 = vld [vmem:[#allocation5 + $0xc0] ss:$28 sps:$4 sm:$0xff]  }
  0xbd   :  { %1138 = vadd.xlane.f32.xlu0 %v1137_v46  ;;  %v1169_v28 = vadd.f32 %v1168_v58, %v1167_v31  ;;  %v1204_v43 = vunpack.c.h.bf16 %v3771_v17  ;;  %v1222_v54 = vcombine.low %v3769_v53, %v3760_v36  ;;  %v1205_v50 = vunpack.c.l.bf16 %v3774_v44  ;;  %v3874_v17 = vld.sshfl [vmem:[#allocation2 + $0x6a] sm:$0x77 pattern:$0x75316420] }
  0xbe   :  { %v1156_v7 = vadd.f32 %v1155_v47, %v1120_v40  ;;  %v1192_v0 = vunpack.c.l.bf16 %v3776_v62  ;;  %v1193_v55 = vunpack.c.h.bf16 %v3776_v62  ;;  %v1194_v49 = vunpack.c.l.bf16 %v3795_v22 }
  0xbf   :  { %v1171_v63 = vadd.f32 %v1170_v39, %v1169_v28  ;;  %v1227_v24 = vrot.slane %v1222_v54, %v3078_v2  ;;  %v1231_v15 = vrot.slane %v1222_v54, %v3081_v3  ;;  %v1235_v52 = vrot.slane %v1222_v54, %v3084_v4 }
  0xc0   :  { %v1157_v41 = vadd.f32 %v1156_v7, %v1121_v29  ;;  %v1239_v11 = vrot.slane %v1222_v54, %v3087_v5  ;;  %v1243_v48 = vrot.slane %v1222_v54, %v3090_v6  ;;  %v1247_v37 = vrot.slane %v1222_v54, %v3093_v10 }
  0xc1   :  { %v1173_v57 = vadd.f32 %v1172_v25, %v1171_v63  ;;  %v1251_v18 = vrot.slane %v1222_v54, %v3096_v16  ;;  %v1301_v20 = vmul.f32 %v1227_v24, %v1199_v30  ;;  %v1302_v56 = vmul.f32 %v1231_v15, %v1200_v34  ;;  %v3831_v63 = vld [vmem:[#allocation5 + $0x24c] sm:$0x11] }
  0xc2   :  { %v1158_v32 = vadd.f32 %v1157_v41, %v1122_v13  ;;  %v1303_v45 = vmul.f32 %v1235_v52, %v1201_v14  ;;  %v1304_v59 = vmul.f32 %v1239_v11, %v1202_v35  ;;  %v1305_v8 = vmul.f32 %v1243_v48, %v1203_v60  ;;  %v3833_v41 = vld [vmem:[#allocation5 + $0x254] sm:$0x11] }
  0xc3   :  { %v1175_v9 = vadd.f32 %v1174_v23, %v1173_v57  ;;  %v1306_v33 = vmul.f32 %v1247_v37, %v1204_v43  ;;  %v1330_v12 = vsel %vm189_vm0, %v1301_v20, 0.0  ;;  %v1307_v58 = vmul.f32 %v1251_v18, %v1205_v50 }
  0xc4   :  { %v1159_v19 = vadd.f32 %v1158_v32, %v1123_v38  ;;  %v1331_v39 = vsel %vm189_vm0, %v1302_v56, 0.0  ;;  %v1333_v25 = vsel %vm189_vm0, %v1303_v45, 0.0  ;;  %v1335_v40 = vsel %vm189_vm0, %v1304_v59, 0.0 }
  0xc5   :  { %1176 = vadd.xlane.f32.xlu1 %v1175_v9  ;;  %v1332_v42 = vadd.f32 %v1331_v39, %v1330_v12  ;;  %v1337_v46 = vsel %vm189_vm0, %v1305_v8, 0.0  ;;  %v1339_v31 = vsel %vm189_vm0, %v1306_v33, 0.0  ;;  %v1195_v29 = vunpack.c.h.bf16 %v3795_v22 }
  0xc6   :  { %v1160_v23 = vadd.f32 %v1159_v19, %v1124_v26  ;;  %v1196_v13 = vunpack.c.l.bf16 %v3811_v21  ;;  %v1197_v38 = vunpack.c.h.bf16 %v3811_v21  ;;  %v1198_v28 = vunpack.c.l.bf16 %v3818_v61 }
  0xc7   :  { %v1334_v47 = vadd.f32 %v1333_v25, %v1332_v42  ;;  %v1294_v54 = vmul.f32 %v1227_v24, %v1192_v0  ;;  %v1295_v7 = vmul.f32 %v1231_v15, %v1193_v55  ;;  %v1341_v26 = vsel %vm189_vm0, %v1307_v58, 0.0 }
  0xc8   :  { %1161 = vadd.xlane.f32.xlu0 %v1160_v23  ;;  %v1296_v57 = vmul.f32 %v1235_v52, %v1194_v49  ;;  %v1297_v20 = vmul.f32 %v1239_v11, %v1195_v29  ;;  %v1298_v56 = vmul.f32 %v1243_v48, %v1196_v13  ;;  %v1299_v24 = vmul.f32 %v1247_v37, %v1197_v38 }
  0xc9   :  { %v1336_v32 = vadd.f32 %v1335_v40, %v1334_v47  ;;  %v1322_v45 = vadd.f32 %v1295_v7, %v1294_v54  ;;  %v1223_v15 = vcombine.high %v3769_v53, %v3760_v36  ;;  %v1300_v59 = vmul.f32 %v1251_v18, %v1198_v28 }
  0xca   :  { %v1389_v8 = vunpack.c.l.bf16 %v3831_v63  ;;  %v1390_v9 = vunpack.c.h.bf16 %v3831_v63  ;;  %v1391_v33 = vunpack.c.l.bf16 %v3833_v41  ;;  %v1392_v27 = vunpack.c.h.bf16 %v3833_v41 }
  0xcb   :  { %v1338_v52 = vadd.f32 %v1337_v46, %v1336_v32  ;;  %v1323_v11 = vadd.f32 %v1322_v45, %v1296_v57  ;;  %v1255_v12 = vrot.slane %v1223_v15, %v3078_v2  ;;  %v1259_v48 = vrot.slane %v1223_v15, %v3081_v3 }
  0xcc   :  { %v1263_v19 = vrot.slane %v1223_v15, %v3084_v4  ;;  %v1267_v37 = vrot.slane %v1223_v15, %v3087_v5  ;;  %v1271_v58 = vrot.slane %v1223_v15, %v3090_v6  ;;  %v1275_v36 = vrot.slane %v1223_v15, %v3093_v10 }
  0xcd   :  { %v1340_v53 = vadd.f32 %v1339_v31, %v1338_v52  ;;  %v1324_v18 = vadd.f32 %v1323_v11, %v1297_v20  ;;  %v1279_v39 = vrot.slane %v1223_v15, %v3096_v16  ;;  %v1315_v25 = vmul.f32 %v1255_v12, %v1199_v30  ;;  %v3883_v20 = vld.sshfl [vmem:[#allocation2 + $0x62] sm:$0xff pattern:$0x75316420] }
  0xce   :  { %v1316_v42 = vmul.f32 %v1259_v48, %v1200_v34  ;;  %v1317_v40 = vmul.f32 %v1263_v19, %v1201_v14  ;;  %v1318_v46 = vmul.f32 %v1267_v37, %v1202_v35  ;;  %v1319_v23 = vmul.f32 %v1271_v58, %v1203_v60  ;;  %v3888_v52 = vld [vmem:[#allocation5 + $0x264] sm:$0x1] }
  0xcf   :  { %v1342_v47 = vadd.f32 %v1341_v26, %v1340_v53  ;;  %v1325_v31 = vadd.f32 %v1324_v18, %v1298_v56  ;;  %v1320_v54 = vmul.f32 %v1275_v36, %v1204_v43  ;;  %v1321_v30 = vmul.f32 %v1279_v39, %v1205_v50  ;;  %v3885_v56 = vld [vmem:[#allocation5 + $0x25c] sm:$0x11]  ;;  %v3890_v11 = vld [vmem:[#allocation5 + $0xc4] sm:$0xff] }
  0xd0   :  { %v1353_v51 = vsel %vm189_vm0, %v1315_v25, 0.0  ;;  %v1354_v34 = vsel %vm189_vm0, %v1316_v42, 0.0  ;;  %v1356_v14 = vsel %vm189_vm0, %v1317_v40, 0.0  ;;  %v1358_v60 = vsel %vm189_vm0, %v1318_v46, 0.0  ;;  %v3909_v25 = vld [vmem:[#allocation5 + $0xcc] sm:$0xff] }
  0xd1   :  { %1343 = vadd.xlane.f32.xlu1 %v1342_v47  ;;  %v1326_v35 = vadd.f32 %v1325_v31, %v1299_v24  ;;  %v1355_v7 = vadd.f32 %v1354_v34, %v1353_v51  ;;  %v1360_v26 = vsel %vm189_vm0, %v1319_v23, 0.0  ;;  %v1362_v44 = vsel %vm189_vm0, %v1320_v54, 0.0 }
  0xd2   :  { %v1308_v43 = vmul.f32 %v1255_v12, %v1192_v0  ;;  %v1309_v50 = vmul.f32 %v1259_v48, %v1193_v55  ;;  %v1310_v57 = vmul.f32 %v1263_v19, %v1194_v49  ;;  %v1364_v45 = vsel %vm189_vm0, %v1321_v30, 0.0 }
  0xd3   :  { %v1327_v32 = vadd.f32 %v1326_v35, %v1300_v59  ;;  %v1357_v24 = vadd.f32 %v1356_v14, %v1355_v7  ;;  %v1311_v15 = vmul.f32 %v1267_v37, %v1195_v29  ;;  %v1312_v62 = vmul.f32 %v1271_v58, %v1196_v13  ;;  %v3925_v35 = vld [vmem:[#allocation5 + $0xd4] sm:$0xff] }
  0xd4   :  { %v1313_v0 = vmul.f32 %v1275_v36, %v1197_v38  ;;  %v1314_v55 = vmul.f32 %v1279_v39, %v1198_v28  ;;  %v1345_v22 = vadd.f32 %v1309_v50, %v1308_v43  ;;  %v1393_v59 = vunpack.c.l.bf16 %v3885_v56 }
  0xd5   :  { %1328 = vadd.xlane.f32.xlu0 %v1327_v32  ;;  %v1359_v49 = vadd.f32 %v1358_v60, %v1357_v24  ;;  %v1394_v12 = vunpack.c.h.bf16 %v3885_v56  ;;  %v1412_v29 = vcombine.low %v3883_v20, %v3874_v17  ;;  %v1395_v19 = vunpack.c.l.bf16 %v3888_v52  ;;  %v3986_v56 = vld.sshfl [vmem:[#allocation2 + $0x78] sm:$0x77 pattern:$0x75316420] }
  0xd6   :  { %v1346_v48 = vadd.f32 %v1345_v22, %v1310_v57  ;;  %v1382_v37 = vunpack.c.l.bf16 %v3890_v11  ;;  %v1383_v13 = vunpack.c.h.bf16 %v3890_v11  ;;  %v1384_v7 = vunpack.c.l.bf16 %v3909_v25 }
  0xd7   :  { %v1361_v21 = vadd.f32 %v1360_v26, %v1359_v49  ;;  %v1417_v38 = vrot.slane %v1412_v29, %v3078_v2  ;;  %v1421_v28 = vrot.slane %v1412_v29, %v3081_v3  ;;  %v1425_v58 = vrot.slane %v1412_v29, %v3084_v4 }
  0xd8   :  { %v1347_v36 = vadd.f32 %v1346_v48, %v1311_v15  ;;  %v1429_v53 = vrot.slane %v1412_v29, %v3087_v5  ;;  %v1433_v18 = vrot.slane %v1412_v29, %v3090_v6  ;;  %v1437_v39 = vrot.slane %v1412_v29, %v3093_v10 }
  0xd9   :  { %v1363_v42 = vadd.f32 %v1362_v44, %v1361_v21  ;;  %v1441_v40 = vrot.slane %v1412_v29, %v3096_v16  ;;  %v1491_v46 = vmul.f32 %v1417_v38, %v1389_v8  ;;  %v1492_v23 = vmul.f32 %v1421_v28, %v1390_v9  ;;  %v3943_v21 = vld [vmem:[#allocation5 + $0x268] sm:$0x11] }
  0xda   :  { %v1348_v47 = vadd.f32 %v1347_v36, %v1312_v62  ;;  %v1493_v31 = vmul.f32 %v1425_v58, %v1391_v33  ;;  %v1494_v54 = vmul.f32 %v1429_v53, %v1392_v27  ;;  %v1495_v30 = vmul.f32 %v1433_v18, %v1393_v59  ;;  %v3945_v36 = vld [vmem:[#allocation5 + $0x270] sm:$0x11] }
  0xdb   :  { %v1365_v51 = vadd.f32 %v1364_v45, %v1363_v42  ;;  %v1496_v34 = vmul.f32 %v1437_v39, %v1394_v12  ;;  %v1520_v14 = vsel %vm189_vm0, %v1491_v46, 0.0  ;;  %v1497_v26 = vmul.f32 %v1441_v40, %v1395_v19 }
  0xdc   :  { %v1349_v60 = vadd.f32 %v1348_v47, %v1313_v0  ;;  %v1521_v44 = vsel %vm189_vm0, %v1492_v23, 0.0  ;;  %v1523_v43 = vsel %vm189_vm0, %v1493_v31, 0.0  ;;  %v1525_v57 = vsel %vm189_vm0, %v1494_v54, 0.0 }
  0xdd   :  { %1366 = vadd.xlane.f32.xlu1 %v1365_v51  ;;  %v1522_v50 = vadd.f32 %v1521_v44, %v1520_v14  ;;  %v1527_v32 = vsel %vm189_vm0, %v1495_v30, 0.0  ;;  %v1529_v24 = vsel %vm189_vm0, %v1496_v34, 0.0  ;;  %v1385_v15 = vunpack.c.h.bf16 %v3909_v25 }
  0xde   :  { %v1350_v45 = vadd.f32 %v1349_v60, %v1314_v55  ;;  %v1386_v62 = vunpack.c.l.bf16 %v3925_v35  ;;  %v1387_v0 = vunpack.c.h.bf16 %v3925_v35  ;;  %v1388_v49 = vunpack.c.h.bf16 %v3818_v61 }
  0xdf   :  { %v1524_v22 = vadd.f32 %v1523_v43, %v1522_v50  ;;  %v1484_v29 = vmul.f32 %v1417_v38, %v1382_v37  ;;  %v1485_v48 = vmul.f32 %v1421_v28, %v1383_v13  ;;  %v1531_v55 = vsel %vm189_vm0, %v1497_v26, 0.0 }
  0xe0   :  { %1351 = vadd.xlane.f32.xlu0 %v1350_v45  ;;  %v1486_v42 = vmul.f32 %v1425_v58, %v1384_v7  ;;  %v1487_v46 = vmul.f32 %v1429_v53, %v1385_v15  ;;  %v1488_v61 = vmul.f32 %v1433_v18, %v1386_v62  ;;  %v1489_v38 = vmul.f32 %v1437_v39, %v1387_v0 }
  0xe1   :  { %v1526_v23 = vadd.f32 %v1525_v57, %v1524_v22  ;;  %v1512_v47 = vadd.f32 %v1485_v48, %v1484_v29  ;;  %v1413_v28 = vcombine.high %v3883_v20, %v3874_v17  ;;  %v1490_v31 = vmul.f32 %v1441_v40, %v1388_v49 }
  0xe2   :  { %v1579_v54 = vunpack.c.l.bf16 %v3943_v21  ;;  %v1580_v30 = vunpack.c.h.bf16 %v3943_v21  ;;  %v1581_v51 = vunpack.c.l.bf16 %v3945_v36  ;;  %v1582_v41 = vunpack.c.h.bf16 %v3945_v36 }
  0xe3   :  { %v1528_v58 = vadd.f32 %v1527_v32, %v1526_v23  ;;  %v1513_v53 = vadd.f32 %v1512_v47, %v1486_v42  ;;  %v1445_v34 = vrot.slane %v1413_v28, %v3078_v2  ;;  %v1449_v18 = vrot.slane %v1413_v28, %v3081_v3  ;;  %v3995_v42 = vld.sshfl [vmem:[#allocation2 + $0x70] sm:$0xff pattern:$0x75316420] }
  0xe4   :  { %v1453_v14 = vrot.slane %v1413_v28, %v3084_v4  ;;  %v1457_v39 = vrot.slane %v1413_v28, %v3087_v5  ;;  %v1461_v60 = vrot.slane %v1413_v28, %v3090_v6  ;;  %v1465_v17 = vrot.slane %v1413_v28, %v3093_v10 }
  0xe5   :  { %v1530_v20 = vadd.f32 %v1529_v24, %v1528_v58  ;;  %v1514_v40 = vadd.f32 %v1513_v53, %v1487_v46  ;;  %v1469_v26 = vrot.slane %v1413_v28, %v3096_v16  ;;  %v1505_v44 = vmul.f32 %v1445_v34, %v1389_v8  ;;  %v3997_v46 = vld [vmem:[#allocation5 + $0x278] sm:$0x11]  ;;  %v4000_v28 = vld [vmem:[#allocation5 + $0x280] sm:$0x1] }
  0xe6   :  { %v1506_v43 = vmul.f32 %v1449_v18, %v1390_v9  ;;  %v1507_v50 = vmul.f32 %v1453_v14, %v1391_v33  ;;  %v1508_v57 = vmul.f32 %v1457_v39, %v1392_v27  ;;  %v1509_v32 = vmul.f32 %v1461_v60, %v1393_v59  ;;  %v4002_v58 = vld [vmem:[#allocation5 + $0xe0] sm:$0xff] }
  0xe7   :  { %v1532_v45 = vadd.f32 %v1531_v55, %v1530_v20  ;;  %v1515_v24 = vadd.f32 %v1514_v40, %v1488_v61  ;;  %v1510_v22 = vmul.f32 %v1465_v17, %v1394_v12  ;;  %v1511_v8 = vmul.f32 %v1469_v26, %v1395_v19 }
  0xe8   :  { %v1543_v63 = vsel %vm189_vm0, %v1505_v44, 0.0  ;;  %v1544_v9 = vsel %vm189_vm0, %v1506_v43, 0.0  ;;  %v1546_v33 = vsel %vm189_vm0, %v1507_v50, 0.0  ;;  %v1548_v59 = vsel %vm189_vm0, %v1508_v57, 0.0 }
  0xe9   :  { %1533 = vadd.xlane.f32.xlu1 %v1532_v45  ;;  %v1516_v27 = vadd.f32 %v1515_v24, %v1489_v38  ;;  %v1545_v29 = vadd.f32 %v1544_v9, %v1543_v63  ;;  %v1550_v48 = vsel %vm189_vm0, %v1509_v32, 0.0  ;;  %v1552_v52 = vsel %vm189_vm0, %v1510_v22, 0.0 }
  0xea   :  { %v1498_v12 = vmul.f32 %v1445_v34, %v1382_v37  ;;  %v1499_v19 = vmul.f32 %v1449_v18, %v1383_v13  ;;  %v1500_v55 = vmul.f32 %v1453_v14, %v1384_v7  ;;  %v1554_v38 = vsel %vm189_vm0, %v1511_v8, 0.0 }
  0xeb   :  { %v1517_v61 = vadd.f32 %v1516_v27, %v1490_v31  ;;  %v1547_v23 = vadd.f32 %v1546_v33, %v1545_v29  ;;  %v1501_v47 = vmul.f32 %v1457_v39, %v1385_v15  ;;  %v1502_v11 = vmul.f32 %v1461_v60, %v1386_v62  ;;  %v4037_v33 = vld [vmem:[#allocation5 + $0xf0] sm:$0xff] }
  0xec   :  { %v1503_v37 = vmul.f32 %v1465_v17, %v1387_v0  ;;  %v1504_v13 = vmul.f32 %v1469_v26, %v1388_v49  ;;  %v1535_v25 = vadd.f32 %v1499_v19, %v1498_v12  ;;  %v1583_v31 = vunpack.c.l.bf16 %v3997_v46  ;;  %v4021_v26 = vld [vmem:[#allocation5 + $0xe8] sm:$0xff]  ;;  %v4044_v12 = vld [vmem:[#allocation5 + $0xf8] ss:$28 sps:$4 sm:$0xff]  }
  0xed   :  { %1518 = vadd.xlane.f32.xlu0 %v1517_v61  ;;  %v1549_v7 = vadd.f32 %v1548_v59, %v1547_v23  ;;  %v1584_v53 = vunpack.c.h.bf16 %v3997_v46  ;;  %v1602_v15 = vcombine.low %v3995_v42, %v3986_v56  ;;  %v1585_v18 = vunpack.c.l.bf16 %v4000_v28  ;;  %v4100_v46 = vld.sshfl [vmem:[#allocation2 + $0x86] sm:$0x77 pattern:$0x75316420] }
  0xee   :  { %v1536_v34 = vadd.f32 %v1535_v25, %v1500_v55  ;;  %v1572_v14 = vunpack.c.l.bf16 %v4002_v58  ;;  %v1573_v62 = vunpack.c.h.bf16 %v4002_v58  ;;  %v1574_v27 = vunpack.c.l.bf16 %v4021_v26 }
  0xef   :  { %v1551_v35 = vadd.f32 %v1550_v48, %v1549_v7  ;;  %v1607_v0 = vrot.slane %v1602_v15, %v3078_v2  ;;  %v1611_v49 = vrot.slane %v1602_v15, %v3081_v3  ;;  %v1615_v39 = vrot.slane %v1602_v15, %v3084_v4 }
  0xf0   :  { %v1537_v60 = vadd.f32 %v1536_v34, %v1501_v47  ;;  %v1619_v17 = vrot.slane %v1602_v15, %v3087_v5  ;;  %v1623_v20 = vrot.slane %v1602_v15, %v3090_v6  ;;  %v1627_v40 = vrot.slane %v1602_v15, %v3093_v10 }
  0xf1   :  { %v1553_v44 = vadd.f32 %v1552_v52, %v1551_v35  ;;  %v1631_v43 = vrot.slane %v1602_v15, %v3096_v16  ;;  %v1681_v50 = vmul.f32 %v1607_v0, %v1579_v54  ;;  %v1682_v57 = vmul.f32 %v1611_v49, %v1580_v30  ;;  %v4057_v35 = vld [vmem:[#allocation5 + $0x284] sm:$0x11] }
  0xf2   :  { %v1538_v32 = vadd.f32 %v1537_v60, %v1502_v11  ;;  %v1683_v45 = vmul.f32 %v1615_v39, %v1581_v51  ;;  %v1684_v24 = vmul.f32 %v1619_v17, %v1582_v41  ;;  %v1685_v22 = vmul.f32 %v1623_v20, %v1583_v31  ;;  %v4059_v60 = vld [vmem:[#allocation5 + $0x28c] sm:$0x11] }
  0xf3   :  { %v1555_v8 = vadd.f32 %v1554_v38, %v1553_v44  ;;  %v1686_v63 = vmul.f32 %v1627_v40, %v1584_v53  ;;  %v1710_v9 = vsel %vm189_vm0, %v1681_v50, 0.0  ;;  %v1687_v59 = vmul.f32 %v1631_v43, %v1585_v18 }
  0xf4   :  { %v1539_v29 = vadd.f32 %v1538_v32, %v1503_v37  ;;  %v1711_v48 = vsel %vm189_vm0, %v1682_v57, 0.0  ;;  %v1713_v52 = vsel %vm189_vm0, %v1683_v45, 0.0  ;;  %v1715_v55 = vsel %vm189_vm0, %v1684_v24, 0.0 }
  0xf5   :  { %1556 = vadd.xlane.f32.xlu1 %v1555_v8  ;;  %v1712_v19 = vadd.f32 %v1711_v48, %v1710_v9  ;;  %v1717_v61 = vsel %vm189_vm0, %v1685_v22, 0.0  ;;  %v1719_v23 = vsel %vm189_vm0, %v1686_v63, 0.0  ;;  %v1575_v47 = vunpack.c.h.bf16 %v4021_v26 }
  0xf6   :  { %v1540_v38 = vadd.f32 %v1539_v29, %v1504_v13  ;;  %v1576_v11 = vunpack.c.l.bf16 %v4037_v33  ;;  %v1577_v37 = vunpack.c.h.bf16 %v4037_v33  ;;  %v1578_v7 = vunpack.c.l.bf16 %v4044_v12 }
  0xf7   :  { %v1714_v25 = vadd.f32 %v1713_v52, %v1712_v19  ;;  %v1674_v15 = vmul.f32 %v1607_v0, %v1572_v14  ;;  %v1675_v34 = vmul.f32 %v1611_v49, %v1573_v62  ;;  %v1721_v13 = vsel %vm189_vm0, %v1687_v59, 0.0 }
  0xf8   :  { %1541 = vadd.xlane.f32.xlu0 %v1540_v38  ;;  %v1676_v44 = vmul.f32 %v1615_v39, %v1574_v27  ;;  %v1677_v50 = vmul.f32 %v1619_v17, %v1575_v47  ;;  %v1678_v57 = vmul.f32 %v1623_v20, %v1576_v11  ;;  %v1679_v0 = vmul.f32 %v1627_v40, %v1577_v37 }
  0xf9   :  { %v1716_v32 = vadd.f32 %v1715_v55, %v1714_v25  ;;  %v1702_v45 = vadd.f32 %v1675_v34, %v1674_v15  ;;  %v1603_v49 = vcombine.high %v3995_v42, %v3986_v56  ;;  %v1680_v24 = vmul.f32 %v1631_v43, %v1578_v7 }
  0xfa   :  { %v1769_v22 = vunpack.c.l.bf16 %v4057_v35  ;;  %v1770_v8 = vunpack.c.h.bf16 %v4057_v35  ;;  %v1771_v63 = vunpack.c.l.bf16 %v4059_v60  ;;  %v1772_v36 = vunpack.c.h.bf16 %v4059_v60 }
  0xfb   :  { %v1718_v39 = vadd.f32 %v1717_v61, %v1716_v32  ;;  %v1703_v17 = vadd.f32 %v1702_v45, %v1676_v44  ;;  %v1635_v9 = vrot.slane %v1603_v49, %v3078_v2  ;;  %v1639_v20 = vrot.slane %v1603_v49, %v3081_v3 }
  0xfc   :  { %v1643_v29 = vrot.slane %v1603_v49, %v3084_v4  ;;  %v1647_v40 = vrot.slane %v1603_v49, %v3087_v5  ;;  %v1651_v59 = vrot.slane %v1603_v49, %v3090_v6  ;;  %v1655_v56 = vrot.slane %v1603_v49, %v3093_v10 }
  0xfd   :  { %v1720_v42 = vadd.f32 %v1719_v23, %v1718_v39  ;;  %v1704_v43 = vadd.f32 %v1703_v17, %v1677_v50  ;;  %v1659_v48 = vrot.slane %v1603_v49, %v3096_v16  ;;  %v1695_v52 = vmul.f32 %v1635_v9, %v1579_v54  ;;  %v4109_v50 = vld.sshfl [vmem:[#allocation2 + $0x7e] sm:$0xff pattern:$0x75316420] }
  0xfe   :  { %v1696_v19 = vmul.f32 %v1639_v20, %v1580_v30  ;;  %v1697_v55 = vmul.f32 %v1643_v29, %v1581_v51  ;;  %v1698_v61 = vmul.f32 %v1647_v40, %v1582_v41  ;;  %v1699_v38 = vmul.f32 %v1651_v59, %v1583_v31  ;;  %v4114_v39 = vld [vmem:[#allocation5 + $0x29c] sm:$0x1] }
  0xff   :  { %v1722_v25 = vadd.f32 %v1721_v13, %v1720_v42  ;;  %v1705_v23 = vadd.f32 %v1704_v43, %v1678_v57  ;;  %v1700_v15 = vmul.f32 %v1655_v56, %v1584_v53  ;;  %v1701_v54 = vmul.f32 %v1659_v48, %v1585_v18  ;;  %v4111_v57 = vld [vmem:[#allocation5 + $0x294] sm:$0x11]  ;;  %v4116_v17 = vld [vmem:[#allocation5 + $0xfc] sm:$0xff] }
 0x100   :  { %v1733_v21 = vsel %vm189_vm0, %v1695_v52, 0.0  ;;  %v1734_v30 = vsel %vm189_vm0, %v1696_v19, 0.0  ;;  %v1736_v51 = vsel %vm189_vm0, %v1697_v55, 0.0  ;;  %v1738_v31 = vsel %vm189_vm0, %v1698_v61, 0.0  ;;  %v4135_v52 = vld [vmem:[#allocation5 + $0x104] sm:$0xff] }
 0x101   :  { %1723 = vadd.xlane.f32.xlu1 %v1722_v25  ;;  %v1706_v41 = vadd.f32 %v1705_v23, %v1679_v0  ;;  %v1735_v34 = vadd.f32 %v1734_v30, %v1733_v21  ;;  %v1740_v13 = vsel %vm189_vm0, %v1699_v38, 0.0  ;;  %v1742_v28 = vsel %vm189_vm0, %v1700_v15, 0.0 }
 0x102   :  { %v1688_v53 = vmul.f32 %v1635_v9, %v1572_v14  ;;  %v1689_v18 = vmul.f32 %v1639_v20, %v1573_v62  ;;  %v1690_v44 = vmul.f32 %v1643_v29, %v1574_v27  ;;  %v1744_v45 = vsel %vm189_vm0, %v1701_v54, 0.0 }
 0x103   :  { %v1707_v32 = vadd.f32 %v1706_v41, %v1680_v24  ;;  %v1737_v0 = vadd.f32 %v1736_v51, %v1735_v34  ;;  %v1691_v49 = vmul.f32 %v1647_v40, %v1575_v47  ;;  %v1692_v58 = vmul.f32 %v1651_v59, %v1576_v11  ;;  %v4151_v41 = vld [vmem:[#allocation5 + $0x10c] sm:$0xff] }
 0x104   :  { %v1693_v14 = vmul.f32 %v1655_v56, %v1577_v37  ;;  %v1694_v62 = vmul.f32 %v1659_v48, %v1578_v7  ;;  %v1725_v26 = vadd.f32 %v1689_v18, %v1688_v53  ;;  %v1773_v24 = vunpack.c.l.bf16 %v4111_v57 }
 0x105   :  { %1708 = vadd.xlane.f32.xlu0 %v1707_v32  ;;  %v1739_v27 = vadd.f32 %v1738_v31, %v1737_v0  ;;  %v1774_v9 = vunpack.c.h.bf16 %v4111_v57  ;;  %v1792_v47 = vcombine.low %v4109_v50, %v4100_v46  ;;  %v1775_v29 = vunpack.c.l.bf16 %v4114_v39  ;;  %v4212_v57 = vld.sshfl [vmem:[#allocation2 + $0x94] sm:$0x77 pattern:$0x75316420] }
 0x106   :  { %v1726_v20 = vadd.f32 %v1725_v26, %v1690_v44  ;;  %v1762_v40 = vunpack.c.l.bf16 %v4116_v17  ;;  %v1763_v11 = vunpack.c.h.bf16 %v4116_v17  ;;  %v1764_v34 = vunpack.c.l.bf16 %v4135_v52 }
 0x107   :  { %v1741_v33 = vadd.f32 %v1740_v13, %v1739_v27  ;;  %v1797_v37 = vrot.slane %v1792_v47, %v3078_v2  ;;  %v1801_v7 = vrot.slane %v1792_v47, %v3081_v3  ;;  %v1805_v59 = vrot.slane %v1792_v47, %v3084_v4 }
 0x108   :  { %v1727_v56 = vadd.f32 %v1726_v20, %v1691_v49  ;;  %v1809_v42 = vrot.slane %v1792_v47, %v3087_v5  ;;  %v1813_v43 = vrot.slane %v1792_v47, %v3090_v6  ;;  %v1817_v48 = vrot.slane %v1792_v47, %v3093_v10 }
 0x109   :  { %v1743_v19 = vadd.f32 %v1742_v28, %v1741_v33  ;;  %v1821_v55 = vrot.slane %v1792_v47, %v3096_v16  ;;  %v1871_v61 = vmul.f32 %v1797_v37, %v1769_v22  ;;  %v1872_v38 = vmul.f32 %v1801_v7, %v1770_v8  ;;  %v4169_v33 = vld [vmem:[#allocation5 + $0x2a0] sm:$0x11] }
 0x10a   :  { %v1728_v25 = vadd.f32 %v1727_v56, %v1692_v58  ;;  %v1873_v23 = vmul.f32 %v1805_v59, %v1771_v63  ;;  %v1874_v15 = vmul.f32 %v1809_v42, %v1772_v36  ;;  %v1875_v54 = vmul.f32 %v1813_v43, %v1773_v24  ;;  %v4171_v56 = vld [vmem:[#allocation5 + $0x2a8] sm:$0x11] }
 0x10b   :  { %v1745_v21 = vadd.f32 %v1744_v45, %v1743_v19  ;;  %v1876_v30 = vmul.f32 %v1817_v48, %v1774_v9  ;;  %v1900_v51 = vsel %vm189_vm0, %v1871_v61, 0.0  ;;  %v1877_v13 = vmul.f32 %v1821_v55, %v1775_v29 }
 0x10c   :  { %v1729_v31 = vadd.f32 %v1728_v25, %v1693_v14  ;;  %v1901_v28 = vsel %vm189_vm0, %v1872_v38, 0.0  ;;  %v1903_v53 = vsel %vm189_vm0, %v1873_v23, 0.0  ;;  %v1905_v44 = vsel %vm189_vm0, %v1874_v15, 0.0 }
 0x10d   :  { %1746 = vadd.xlane.f32.xlu1 %v1745_v21  ;;  %v1902_v18 = vadd.f32 %v1901_v28, %v1900_v51  ;;  %v1907_v32 = vsel %vm189_vm0, %v1875_v54, 0.0  ;;  %v1909_v0 = vsel %vm189_vm0, %v1876_v30, 0.0  ;;  %v1765_v49 = vunpack.c.h.bf16 %v4135_v52 }
 0x10e   :  { %v1730_v45 = vadd.f32 %v1729_v31, %v1694_v62  ;;  %v1766_v58 = vunpack.c.l.bf16 %v4151_v41  ;;  %v1767_v14 = vunpack.c.h.bf16 %v4151_v41  ;;  %v1768_v27 = vunpack.c.h.bf16 %v4044_v12 }
 0x10f   :  { %v1904_v26 = vadd.f32 %v1903_v53, %v1902_v18  ;;  %v1864_v47 = vmul.f32 %v1797_v37, %v1762_v40  ;;  %v1865_v20 = vmul.f32 %v1801_v7, %v1763_v11  ;;  %v1911_v62 = vsel %vm189_vm0, %v1877_v13, 0.0 }
 0x110   :  { %1731 = vadd.xlane.f32.xlu0 %v1730_v45  ;;  %v1866_v19 = vmul.f32 %v1805_v59, %v1764_v34  ;;  %v1867_v61 = vmul.f32 %v1809_v42, %v1765_v49  ;;  %v1868_v12 = vmul.f32 %v1813_v43, %v1766_v58  ;;  %v1869_v37 = vmul.f32 %v1817_v48, %v1767_v14 }
 0x111   :  { %v1906_v38 = vadd.f32 %v1905_v44, %v1904_v26  ;;  %v1892_v25 = vadd.f32 %v1865_v20, %v1864_v47  ;;  %v1793_v7 = vcombine.high %v4109_v50, %v4100_v46  ;;  %v1870_v23 = vmul.f32 %v1821_v55, %v1768_v27 }
 0x112   :  { %v1959_v15 = vunpack.c.l.bf16 %v4169_v33  ;;  %v1960_v54 = vunpack.c.h.bf16 %v4169_v33  ;;  %v1961_v21 = vunpack.c.l.bf16 %v4171_v56  ;;  %v1962_v60 = vunpack.c.h.bf16 %v4171_v56 }
 0x113   :  { %v1908_v59 = vadd.f32 %v1907_v32, %v1906_v38  ;;  %v1893_v42 = vadd.f32 %v1892_v25, %v1866_v19  ;;  %v1825_v30 = vrot.slane %v1793_v7, %v3078_v2  ;;  %v1829_v43 = vrot.slane %v1793_v7, %v3081_v3  ;;  %v4221_v19 = vld.sshfl [vmem:[#allocation2 + $0x8c] sm:$0xff pattern:$0x75316420] }
 0x114   :  { %v1833_v51 = vrot.slane %v1793_v7, %v3084_v4  ;;  %v1837_v48 = vrot.slane %v1793_v7, %v3087_v5  ;;  %v1841_v31 = vrot.slane %v1793_v7, %v3090_v6  ;;  %v1845_v46 = vrot.slane %v1793_v7, %v3093_v10 }
 0x115   :  { %v1910_v50 = vadd.f32 %v1909_v0, %v1908_v59  ;;  %v1894_v55 = vadd.f32 %v1893_v42, %v1867_v61  ;;  %v1849_v13 = vrot.slane %v1793_v7, %v3096_v16  ;;  %v1885_v28 = vmul.f32 %v1825_v30, %v1769_v22  ;;  %v4223_v61 = vld [vmem:[#allocation5 + $0x2b0] sm:$0x11]  ;;  %v4226_v7 = vld [vmem:[#allocation5 + $0x2b8] sm:$0x1] }
 0x116   :  { %v1886_v53 = vmul.f32 %v1829_v43, %v1770_v8  ;;  %v1887_v18 = vmul.f32 %v1833_v51, %v1771_v63  ;;  %v1888_v44 = vmul.f32 %v1837_v48, %v1772_v36  ;;  %v1889_v32 = vmul.f32 %v1841_v31, %v1773_v24  ;;  %v4228_v59 = vld [vmem:[#allocation5 + $0x118] sm:$0xff] }
 0x117   :  { %v1912_v45 = vadd.f32 %v1911_v62, %v1910_v50  ;;  %v1895_v0 = vadd.f32 %v1894_v55, %v1868_v12  ;;  %v1890_v26 = vmul.f32 %v1845_v46, %v1774_v9  ;;  %v1891_v22 = vmul.f32 %v1849_v13, %v1775_v29 }
 0x118   :  { %v1923_v35 = vsel %vm189_vm0, %v1885_v28, 0.0  ;;  %v1924_v8 = vsel %vm189_vm0, %v1886_v53, 0.0  ;;  %v1926_v63 = vsel %vm189_vm0, %v1887_v18, 0.0  ;;  %v1928_v24 = vsel %vm189_vm0, %v1888_v44, 0.0 }
 0x119   :  { %1913 = vadd.xlane.f32.xlu1 %v1912_v45  ;;  %v1896_v36 = vadd.f32 %v1895_v0, %v1869_v37  ;;  %v1925_v47 = vadd.f32 %v1924_v8, %v1923_v35  ;;  %v1930_v20 = vsel %vm189_vm0, %v1889_v32, 0.0  ;;  %v1932_v39 = vsel %vm189_vm0, %v1890_v26, 0.0 }
 0x11a   :  { %v1878_v9 = vmul.f32 %v1825_v30, %v1762_v40  ;;  %v1879_v29 = vmul.f32 %v1829_v43, %v1763_v11  ;;  %v1880_v62 = vmul.f32 %v1833_v51, %v1764_v34  ;;  %v1934_v37 = vsel %vm189_vm0, %v1891_v22, 0.0 }
 0x11b   :  { %v1897_v12 = vadd.f32 %v1896_v36, %v1870_v23  ;;  %v1927_v38 = vadd.f32 %v1926_v63, %v1925_v47  ;;  %v1881_v25 = vmul.f32 %v1837_v48, %v1765_v49  ;;  %v1882_v17 = vmul.f32 %v1841_v31, %v1766_v58  ;;  %v4263_v63 = vld [vmem:[#allocation5 + $0x128] sm:$0xff] }
 0x11c   :  { %v1883_v40 = vmul.f32 %v1845_v46, %v1767_v14  ;;  %v1884_v11 = vmul.f32 %v1849_v13, %v1768_v27  ;;  %v1915_v52 = vadd.f32 %v1879_v29, %v1878_v9  ;;  %v1963_v23 = vunpack.c.l.bf16 %v4223_v61  ;;  %v4247_v13 = vld [vmem:[#allocation5 + $0x120] sm:$0xff]  ;;  %v4270_v9 = vld [vmem:[#allocation5 + $0x130] ss:$28 sps:$4 sm:$0xff]  }
 0x11d   :  { %1898 = vadd.xlane.f32.xlu0 %v1897_v12  ;;  %v1929_v34 = vadd.f32 %v1928_v24, %v1927_v38  ;;  %v1964_v42 = vunpack.c.h.bf16 %v4223_v61  ;;  %v1982_v49 = vcombine.low %v4221_v19, %v4212_v57  ;;  %v1965_v43 = vunpack.c.l.bf16 %v4226_v7  ;;  %v4326_v61 = vld.sshfl [vmem:[#allocation2 + $0xa2] sm:$0x77 pattern:$0x75316420] }
 0x11e   :  { %v1916_v30 = vadd.f32 %v1915_v52, %v1880_v62  ;;  %v1952_v51 = vunpack.c.l.bf16 %v4228_v59  ;;  %v1953_v58 = vunpack.c.h.bf16 %v4228_v59  ;;  %v1954_v36 = vunpack.c.l.bf16 %v4247_v13 }
 0x11f   :  { %v1931_v41 = vadd.f32 %v1930_v20, %v1929_v34  ;;  %v1987_v14 = vrot.slane %v1982_v49, %v3078_v2  ;;  %v1991_v27 = vrot.slane %v1982_v49, %v3081_v3  ;;  %v1995_v48 = vrot.slane %v1982_v49, %v3084_v4 }
 0x120   :  { %v1917_v31 = vadd.f32 %v1916_v30, %v1881_v25  ;;  %v1999_v46 = vrot.slane %v1982_v49, %v3087_v5  ;;  %v2003_v50 = vrot.slane %v1982_v49, %v3090_v6  ;;  %v2007_v55 = vrot.slane %v1982_v49, %v3093_v10 }
 0x121   :  { %v1933_v28 = vadd.f32 %v1932_v39, %v1931_v41  ;;  %v2011_v53 = vrot.slane %v1982_v49, %v3096_v16  ;;  %v2061_v18 = vmul.f32 %v1987_v14, %v1959_v15  ;;  %v2062_v44 = vmul.f32 %v1991_v27, %v1960_v54  ;;  %v4283_v41 = vld [vmem:[#allocation5 + $0x2bc] sm:$0x11] }
 0x122   :  { %v1918_v32 = vadd.f32 %v1917_v31, %v1882_v17  ;;  %v2063_v45 = vmul.f32 %v1995_v48, %v1961_v21  ;;  %v2064_v0 = vmul.f32 %v1999_v46, %v1962_v60  ;;  %v2065_v26 = vmul.f32 %v2003_v50, %v1963_v23  ;;  %v4285_v31 = vld [vmem:[#allocation5 + $0x2c4] sm:$0x11] }
 0x123   :  { %v1935_v22 = vadd.f32 %v1934_v37, %v1933_v28  ;;  %v2066_v35 = vmul.f32 %v2007_v55, %v1964_v42  ;;  %v2090_v8 = vsel %vm189_vm0, %v2061_v18, 0.0  ;;  %v2067_v24 = vmul.f32 %v2011_v53, %v1965_v43 }
 0x124   :  { %v1919_v47 = vadd.f32 %v1918_v32, %v1883_v40  ;;  %v2091_v20 = vsel %vm189_vm0, %v2062_v44, 0.0  ;;  %v2093_v39 = vsel %vm189_vm0, %v2063_v45, 0.0  ;;  %v2095_v62 = vsel %vm189_vm0, %v2064_v0, 0.0 }
 0x125   :  { %1936 = vadd.xlane.f32.xlu1 %v1935_v22  ;;  %v2092_v29 = vadd.f32 %v2091_v20, %v2090_v8  ;;  %v2097_v12 = vsel %vm189_vm0, %v2065_v26, 0.0  ;;  %v2099_v38 = vsel %vm189_vm0, %v2066_v35, 0.0  ;;  %v1955_v25 = vunpack.c.h.bf16 %v4247_v13 }
 0x126   :  { %v1920_v37 = vadd.f32 %v1919_v47, %v1884_v11  ;;  %v1956_v17 = vunpack.c.l.bf16 %v4263_v63  ;;  %v1957_v40 = vunpack.c.h.bf16 %v4263_v63  ;;  %v1958_v34 = vunpack.c.l.bf16 %v4270_v9 }
 0x127   :  { %v2094_v52 = vadd.f32 %v2093_v39, %v2092_v29  ;;  %v2054_v49 = vmul.f32 %v1987_v14, %v1952_v51  ;;  %v2055_v30 = vmul.f32 %v1991_v27, %v1953_v58  ;;  %v2101_v11 = vsel %vm189_vm0, %v2067_v24, 0.0 }
 0x128   :  { %1921 = vadd.xlane.f32.xlu0 %v1920_v37  ;;  %v2056_v28 = vmul.f32 %v1995_v48, %v1954_v36  ;;  %v2057_v18 = vmul.f32 %v1999_v46, %v1955_v25  ;;  %v2058_v44 = vmul.f32 %v2003_v50, %v1956_v17  ;;  %v2059_v14 = vmul.f32 %v2007_v55, %v1957_v40 }
 0x129   :  { %v2096_v32 = vadd.f32 %v2095_v62, %v2094_v52  ;;  %v2082_v45 = vadd.f32 %v2055_v30, %v2054_v49  ;;  %v1983_v27 = vcombine.high %v4221_v19, %v4212_v57  ;;  %v2060_v0 = vmul.f32 %v2011_v53, %v1958_v34 }
 0x12a   :  { %v2149_v26 = vunpack.c.l.bf16 %v4283_v41  ;;  %v2150_v22 = vunpack.c.h.bf16 %v4283_v41  ;;  %v2151_v35 = vunpack.c.l.bf16 %v4285_v31  ;;  %v2152_v56 = vunpack.c.h.bf16 %v4285_v31 }
 0x12b   :  { %v2098_v48 = vadd.f32 %v2097_v12, %v2096_v32  ;;  %v2083_v46 = vadd.f32 %v2082_v45, %v2056_v28  ;;  %v2015_v8 = vrot.slane %v1983_v27, %v3078_v2  ;;  %v2019_v50 = vrot.slane %v1983_v27, %v3081_v3 }
 0x12c   :  { %v2023_v47 = vrot.slane %v1983_v27, %v3084_v4  ;;  %v2027_v55 = vrot.slane %v1983_v27, %v3087_v5  ;;  %v2031_v24 = vrot.slane %v1983_v27, %v3090_v6  ;;  %v2035_v57 = vrot.slane %v1983_v27, %v3093_v10 }
 0x12d   :  { %v2100_v19 = vadd.f32 %v2099_v38, %v2098_v48  ;;  %v2084_v53 = vadd.f32 %v2083_v46, %v2057_v18  ;;  %v2039_v20 = vrot.slane %v1983_v27, %v3096_v16  ;;  %v2075_v39 = vmul.f32 %v2015_v8, %v1959_v15  ;;  %v4335_v18 = vld.sshfl [vmem:[#allocation2 + $0x9a] sm:$0xff pattern:$0x75316420]  ;;  %v4340_v48 = vld [vmem:[#allocation5 + $0x2d4] sm:$0x1] }
 0x12e   :  { %v2076_v29 = vmul.f32 %v2019_v50, %v1960_v54  ;;  %v2077_v62 = vmul.f32 %v2023_v47, %v1961_v21  ;;  %v2078_v12 = vmul.f32 %v2027_v55, %v1962_v60  ;;  %v2079_v37 = vmul.f32 %v2031_v24, %v1963_v23  ;;  %v4342_v46 = vld [vmem:[#allocation5 + $0x134] sm:$0xff] }
 0x12f   :  { %v2102_v52 = vadd.f32 %v2101_v11, %v2100_v19  ;;  %v2085_v38 = vadd.f32 %v2084_v53, %v2058_v44  ;;  %v2080_v49 = vmul.f32 %v2035_v57, %v1964_v42  ;;  %v2081_v15 = vmul.f32 %v2039_v20, %v1965_v43  ;;  %v4337_v44 = vld [vmem:[#allocation5 + $0x2cc] sm:$0x11] }
 0x130   :  { %v2113_v33 = vsel %vm189_vm0, %v2075_v39, 0.0  ;;  %v2114_v54 = vsel %vm189_vm0, %v2076_v29, 0.0  ;;  %v2116_v21 = vsel %vm189_vm0, %v2077_v62, 0.0  ;;  %v2118_v23 = vsel %vm189_vm0, %v2078_v12, 0.0  ;;  %v4361_v39 = vld [vmem:[#allocation5 + $0x13c] sm:$0xff] }
 0x131   :  { %2103 = vadd.xlane.f32.xlu1 %v2102_v52  ;;  %v2086_v60 = vadd.f32 %v2085_v38, %v2059_v14  ;;  %v2115_v30 = vadd.f32 %v2114_v54, %v2113_v33  ;;  %v2120_v11 = vsel %vm189_vm0, %v2079_v37, 0.0  ;;  %v2122_v7 = vsel %vm189_vm0, %v2080_v49, 0.0 }
 0x132   :  { %v2068_v42 = vmul.f32 %v2015_v8, %v1952_v51  ;;  %v2069_v43 = vmul.f32 %v2019_v50, %v1953_v58  ;;  %v2070_v28 = vmul.f32 %v2023_v47, %v1954_v36  ;;  %v2124_v45 = vsel %vm189_vm0, %v2081_v15, 0.0 }
 0x133   :  { %v2087_v32 = vadd.f32 %v2086_v60, %v2060_v0  ;;  %v2117_v14 = vadd.f32 %v2116_v21, %v2115_v30  ;;  %v2071_v27 = vmul.f32 %v2027_v55, %v1955_v25  ;;  %v2072_v59 = vmul.f32 %v2031_v24, %v1956_v17  ;;  %v4377_v60 = vld [vmem:[#allocation5 + $0x144] sm:$0xff] }
 0x134   :  { %v2073_v51 = vmul.f32 %v2035_v57, %v1957_v40  ;;  %v2074_v58 = vmul.f32 %v2039_v20, %v1958_v34  ;;  %v2105_v13 = vadd.f32 %v2069_v43, %v2068_v42  ;;  %v2153_v0 = vunpack.c.l.bf16 %v4337_v44 }
 0x135   :  { %2088 = vadd.xlane.f32.xlu0 %v2087_v32  ;;  %v2119_v36 = vadd.f32 %v2118_v23, %v2117_v14  ;;  %v2154_v8 = vunpack.c.h.bf16 %v4337_v44  ;;  %v2172_v25 = vcombine.low %v4335_v18, %v4326_v61  ;;  %v2155_v47 = vunpack.c.l.bf16 %v4340_v48  ;;  %v4438_v44 = vld.sshfl [vmem:[#allocation2 + $0xb0] sm:$0x77 pattern:$0x75316420] }
 0x136   :  { %v2106_v50 = vadd.f32 %v2105_v13, %v2070_v28  ;;  %v2142_v55 = vunpack.c.l.bf16 %v4342_v46  ;;  %v2143_v17 = vunpack.c.h.bf16 %v4342_v46  ;;  %v2144_v30 = vunpack.c.l.bf16 %v4361_v39 }
 0x137   :  { %v2121_v63 = vadd.f32 %v2120_v11, %v2119_v36  ;;  %v2177_v40 = vrot.slane %v2172_v25, %v3078_v2  ;;  %v2181_v34 = vrot.slane %v2172_v25, %v3081_v3  ;;  %v2185_v24 = vrot.slane %v2172_v25, %v3084_v4 }
 0x138   :  { %v2107_v57 = vadd.f32 %v2106_v50, %v2071_v27  ;;  %v2189_v19 = vrot.slane %v2172_v25, %v3087_v5  ;;  %v2193_v53 = vrot.slane %v2172_v25, %v3090_v6  ;;  %v2197_v20 = vrot.slane %v2172_v25, %v3093_v10 }
 0x139   :  { %v2123_v29 = vadd.f32 %v2122_v7, %v2121_v63  ;;  %v2201_v62 = vrot.slane %v2172_v25, %v3096_v16  ;;  %v2251_v12 = vmul.f32 %v2177_v40, %v2149_v26  ;;  %v2252_v37 = vmul.f32 %v2181_v34, %v2150_v22  ;;  %v4395_v63 = vld [vmem:[#allocation5 + $0x2d8] sm:$0x11] }
 0x13a   :  { %v2108_v52 = vadd.f32 %v2107_v57, %v2072_v59  ;;  %v2253_v38 = vmul.f32 %v2185_v24, %v2151_v35  ;;  %v2254_v49 = vmul.f32 %v2189_v19, %v2152_v56  ;;  %v2255_v15 = vmul.f32 %v2193_v53, %v2153_v0  ;;  %v4397_v57 = vld [vmem:[#allocation5 + $0x2e0] sm:$0x11] }
 0x13b   :  { %v2125_v33 = vadd.f32 %v2124_v45, %v2123_v29  ;;  %v2256_v54 = vmul.f32 %v2197_v20, %v2154_v8  ;;  %v2280_v21 = vsel %vm189_vm0, %v2251_v12, 0.0  ;;  %v2257_v11 = vmul.f32 %v2201_v62, %v2155_v47 }
 0x13c   :  { %v2109_v23 = vadd.f32 %v2108_v52, %v2073_v51  ;;  %v2281_v7 = vsel %vm189_vm0, %v2252_v37, 0.0  ;;  %v2283_v42 = vsel %vm189_vm0, %v2253_v38, 0.0  ;;  %v2285_v28 = vsel %vm189_vm0, %v2254_v49, 0.0 }
 0x13d   :  { %2126 = vadd.xlane.f32.xlu1 %v2125_v33  ;;  %v2282_v43 = vadd.f32 %v2281_v7, %v2280_v21  ;;  %v2287_v32 = vsel %vm189_vm0, %v2255_v15, 0.0  ;;  %v2289_v14 = vsel %vm189_vm0, %v2256_v54, 0.0  ;;  %v2145_v27 = vunpack.c.h.bf16 %v4361_v39 }
 0x13e   :  { %v2110_v45 = vadd.f32 %v2109_v23, %v2074_v58  ;;  %v2146_v59 = vunpack.c.l.bf16 %v4377_v60  ;;  %v2147_v51 = vunpack.c.h.bf16 %v4377_v60  ;;  %v2148_v36 = vunpack.c.h.bf16 %v4270_v9 }
 0x13f   :  { %v2284_v13 = vadd.f32 %v2283_v42, %v2282_v43  ;;  %v2244_v25 = vmul.f32 %v2177_v40, %v2142_v55  ;;  %v2245_v50 = vmul.f32 %v2181_v34, %v2143_v17  ;;  %v2291_v58 = vsel %vm189_vm0, %v2257_v11, 0.0 }
 0x140   :  { %2111 = vadd.xlane.f32.xlu0 %v2110_v45  ;;  %v2246_v29 = vmul.f32 %v2185_v24, %v2144_v30  ;;  %v2247_v12 = vmul.f32 %v2189_v19, %v2145_v27  ;;  %v2248_v9 = vmul.f32 %v2193_v53, %v2146_v59  ;;  %v2249_v40 = vmul.f32 %v2197_v20, %v2147_v51 }
 0x141   :  { %v2286_v37 = vadd.f32 %v2285_v28, %v2284_v13  ;;  %v2272_v52 = vadd.f32 %v2245_v50, %v2244_v25  ;;  %v2173_v34 = vcombine.high %v4335_v18, %v4326_v61  ;;  %v2250_v38 = vmul.f32 %v2201_v62, %v2148_v36 }
 0x142   :  { %v2339_v49 = vunpack.c.l.bf16 %v4395_v63  ;;  %v2340_v15 = vunpack.c.h.bf16 %v4395_v63  ;;  %v2341_v33 = vunpack.c.l.bf16 %v4397_v57  ;;  %v2342_v31 = vunpack.c.h.bf16 %v4397_v57 }
 0x143   :  { %v2288_v24 = vadd.f32 %v2287_v32, %v2286_v37  ;;  %v2273_v19 = vadd.f32 %v2272_v52, %v2246_v29  ;;  %v2205_v54 = vrot.slane %v2173_v34, %v3078_v2  ;;  %v2209_v53 = vrot.slane %v2173_v34, %v3081_v3  ;;  %v4447_v29 = vld.sshfl [vmem:[#allocation2 + $0xa8] sm:$0xff pattern:$0x75316420] }
 0x144   :  { %v2213_v21 = vrot.slane %v2173_v34, %v3084_v4  ;;  %v2217_v20 = vrot.slane %v2173_v34, %v3087_v5  ;;  %v2221_v23 = vrot.slane %v2173_v34, %v3090_v6  ;;  %v2225_v61 = vrot.slane %v2173_v34, %v3093_v10 }
 0x145   :  { %v2290_v18 = vadd.f32 %v2289_v14, %v2288_v24  ;;  %v2274_v62 = vadd.f32 %v2273_v19, %v2247_v12  ;;  %v2229_v11 = vrot.slane %v2173_v34, %v3096_v16  ;;  %v2265_v7 = vmul.f32 %v2205_v54, %v2149_v26  ;;  %v4449_v12 = vld [vmem:[#allocation5 + $0x2e8] sm:$0x11]  ;;  %v4452_v34 = vld [vmem:[#allocation5 + $0x2f0] sm:$0x1] }
 0x146   :  { %v2266_v42 = vmul.f32 %v2209_v53, %v2150_v22  ;;  %v2267_v43 = vmul.f32 %v2213_v21, %v2151_v35  ;;  %v2268_v28 = vmul.f32 %v2217_v20, %v2152_v56  ;;  %v2269_v32 = vmul.f32 %v2221_v23, %v2153_v0  ;;  %v4454_v24 = vld [vmem:[#allocation5 + $0x150] sm:$0xff] }
 0x147   :  { %v2292_v45 = vadd.f32 %v2291_v58, %v2290_v18  ;;  %v2275_v14 = vadd.f32 %v2274_v62, %v2248_v9  ;;  %v2270_v13 = vmul.f32 %v2225_v61, %v2154_v8  ;;  %v2271_v26 = vmul.f32 %v2229_v11, %v2155_v47 }
 0x148   :  { %v2303_v41 = vsel %vm189_vm0, %v2265_v7, 0.0  ;;  %v2304_v22 = vsel %vm189_vm0, %v2266_v42, 0.0  ;;  %v2306_v35 = vsel %vm189_vm0, %v2267_v43, 0.0  ;;  %v2308_v0 = vsel %vm189_vm0, %v2268_v28, 0.0 }
 0x149   :  { %2293 = vadd.xlane.f32.xlu1 %v2292_v45  ;;  %v2276_v56 = vadd.f32 %v2275_v14, %v2249_v40  ;;  %v2305_v25 = vadd.f32 %v2304_v22, %v2303_v41  ;;  %v2310_v50 = vsel %vm189_vm0, %v2269_v32, 0.0  ;;  %v2312_v48 = vsel %vm189_vm0, %v2270_v13, 0.0 }
 0x14a   :  { %v2258_v8 = vmul.f32 %v2205_v54, %v2142_v55  ;;  %v2259_v47 = vmul.f32 %v2209_v53, %v2143_v17  ;;  %v2260_v58 = vmul.f32 %v2213_v21, %v2144_v30  ;;  %v2314_v40 = vsel %vm189_vm0, %v2271_v26, 0.0  ;;  %v4485_v26 = vpop.xlane.xlu0 %187 }
 0x14b   :  { %v2277_v9 = vadd.f32 %v2276_v56, %v2250_v38  ;;  %v2307_v37 = vadd.f32 %v2306_v35, %v2305_v25  ;;  %v2261_v52 = vmul.f32 %v2217_v20, %v2145_v27  ;;  %v2262_v46 = vmul.f32 %v2221_v23, %v2146_v59  ;;  %v4470_v23 = vld [vmem:[#allocation5 + $0x158] sm:$0xff]  ;;  %v4492_v25 = vld [vmem:[#allocation5 + $0x160] sm:$0xff] }
 0x14c   :  { %v2263_v55 = vmul.f32 %v2225_v61, %v2147_v51  ;;  %v2264_v17 = vmul.f32 %v2229_v11, %v2148_v36  ;;  %v2295_v39 = vadd.f32 %v2259_v47, %v2258_v8  ;;  %v2343_v38 = vunpack.c.l.bf16 %v4449_v12  ;;  %v4498_v47 = vld [vmem:[#allocation5 + $0x168] ss:$28 sps:$4 sm:$0xff]  }
 0x14d   :  { %2278 = vadd.xlane.f32.xlu0 %v2277_v9  ;;  %v2309_v30 = vadd.f32 %v2308_v0, %v2307_v37  ;;  %v2344_v19 = vunpack.c.h.bf16 %v4449_v12  ;;  %v2362_v27 = vcombine.low %v4447_v29, %v4438_v44  ;;  %v2345_v53 = vunpack.c.l.bf16 %v4452_v34 }
 0x14e   :  { %v2296_v54 = vadd.f32 %v2295_v39, %v2260_v58  ;;  %v2332_v21 = vunpack.c.l.bf16 %v4454_v24  ;;  %v2333_v59 = vunpack.c.h.bf16 %v4454_v24  ;;  %v2334_v13 = vunpack.c.l.bf16 %v4470_v23 }
 0x14f   :  { %v2311_v60 = vadd.f32 %v2310_v50, %v2309_v30  ;;  %v2367_v51 = vrot.slane %v2362_v27, %v3078_v2  ;;  %v2371_v36 = vrot.slane %v2362_v27, %v3081_v3  ;;  %v2375_v20 = vrot.slane %v2362_v27, %v3084_v4 }
 0x150   :  { %v2297_v61 = vadd.f32 %v2296_v54, %v2261_v52  ;;  %v2379_v18 = vrot.slane %v2362_v27, %v3087_v5  ;;  %v2383_v62 = vrot.slane %v2362_v27, %v3090_v6  ;;  %v2387_v11 = vrot.slane %v2362_v27, %v3093_v10  ;;  %v4509_v54 = vld [vmem:[#allocation5 + $0x2f4] sm:$0x11] }
 0x151   :  { %v2313_v7 = vadd.f32 %v2312_v48, %v2311_v60  ;;  %v2391_v42 = vrot.slane %v2362_v27, %v3096_v16  ;;  %v2441_v43 = vmul.f32 %v2367_v51, %v2339_v49  ;;  %v2442_v28 = vmul.f32 %v2371_v36, %v2340_v15 }
 0x152   :  { %v2298_v32 = vadd.f32 %v2297_v61, %v2262_v46  ;;  %v2443_v45 = vmul.f32 %v2375_v20, %v2341_v33  ;;  %v2444_v14 = vmul.f32 %v2379_v18, %v2342_v31  ;;  %v2445_v22 = vmul.f32 %v2383_v62, %v2343_v38 }
 0x153   :  { %v2315_v41 = vadd.f32 %v2314_v40, %v2313_v7  ;;  %v2446_v35 = vmul.f32 %v2387_v11, %v2344_v19  ;;  %v2470_v56 = vsel %vm189_vm0, %v2441_v43, 0.0  ;;  %v2447_v50 = vmul.f32 %v2391_v42, %v2345_v53  ;;  %v4516_v43 = vpop.xlane.xlu0 %378 }
 0x154   :  { %v2299_v0 = vadd.f32 %v2298_v32, %v2263_v55  ;;  %v2471_v48 = vsel %vm189_vm0, %v2442_v28, 0.0  ;;  %v2473_v8 = vsel %vm189_vm0, %v2443_v45, 0.0  ;;  %v2475_v9 = vsel %vm189_vm0, %v2444_v14, 0.0 }
 0x155   :  { %2316 = vadd.xlane.f32.xlu1 %v2315_v41  ;;  %v2472_v58 = vadd.f32 %v2471_v48, %v2470_v56  ;;  %v2335_v40 = vunpack.c.h.bf16 %v4470_v23  ;;  %v2336_v52 = vunpack.c.l.bf16 %v4492_v25  ;;  %v2337_v46 = vunpack.c.h.bf16 %v4492_v25 }
 0x156   :  { %v2300_v37 = vadd.f32 %v2299_v0, %v2264_v17  ;;  %v2338_v39 = vunpack.c.l.bf16 %v4498_v47  ;;  %v2434_v30 = vmul.f32 %v2367_v51, %v2332_v21  ;;  %v2435_v27 = vmul.f32 %v2371_v36, %v2333_v59 }
 0x157   :  { %v2474_v55 = vadd.f32 %v2473_v8, %v2472_v58  ;;  %v2477_v17 = vsel %vm189_vm0, %v2445_v22, 0.0  ;;  %v2479_v60 = vsel %vm189_vm0, %v2446_v35, 0.0  ;;  %v2481_v61 = vsel %vm189_vm0, %v2447_v50, 0.0  ;;  %v4529_v22 = vpop.xlane.xlu1 %211 }
 0x158   :  { %2301 = vadd.xlane.f32.xlu0 %v2300_v37  ;;  %v2436_v7 = vmul.f32 %v2375_v20, %v2334_v13  ;;  %v2437_v51 = vmul.f32 %v2379_v18, %v2335_v40  ;;  %v2462_v32 = vadd.f32 %v2435_v27, %v2434_v30  ;;  %v2363_v36 = vcombine.high %v4447_v29, %v4438_v44  ;;  %v4549_v27 = vpop.xlane.xlu0 %401 }
 0x159   :  { %v2476_v28 = vadd.f32 %v2475_v9, %v2474_v55  ;;  %v2438_v45 = vmul.f32 %v2383_v62, %v2336_v52  ;;  %v2439_v14 = vmul.f32 %v2387_v11, %v2337_v46  ;;  %v2440_v41 = vmul.f32 %v2391_v42, %v2338_v39  ;;  %v4546_v55 = vld [vmem:[#allocation5 + $0x2fc] sm:$0x11] }
 0x15a   :  { %v2529_v20 = vunpack.c.l.bf16 %v4509_v54  ;;  %v2463_v56 = vadd.f32 %v2462_v32, %v2436_v7  ;;  %v2395_v18 = vrot.slane %v2363_v36, %v3078_v2  ;;  %v2399_v0 = vrot.slane %v2363_v36, %v3081_v3 }
 0x15b   :  { %v2478_v35 = vadd.f32 %v2477_v17, %v2476_v28  ;;  %v2403_v44 = vrot.slane %v2363_v36, %v3084_v4  ;;  %v2407_v29 = vrot.slane %v2363_v36, %v3087_v5  ;;  %v2411_v62 = vrot.slane %v2363_v36, %v3090_v6  ;;  %v4560_v7 = vpop.xlane.xlu1 %226 }
 0x15c   :  { %v2415_v11 = vrot.slane %v2363_v36, %v3093_v10  ;;  %v2464_v42 = vadd.f32 %v2463_v56, %v2437_v51  ;;  %v2419_v48 = vrot.slane %v2363_v36, %v3096_v16  ;;  %v2455_v8 = vmul.f32 %v2395_v18, %v2339_v49  ;;  %v4562_v51 = vld.sshfl [vmem:[#allocation2 + $0xb6] sm:$0xff pattern:$0x75316420] }
 0x15d   :  { %v2480_v50 = vadd.f32 %v2479_v60, %v2478_v35  ;;  %v2456_v58 = vmul.f32 %v2399_v0, %v2340_v15  ;;  %v2457_v9 = vmul.f32 %v2403_v44, %v2341_v33  ;;  %v2458_v37 = vmul.f32 %v2407_v29, %v2342_v31  ;;  %v4573_v36 = vld.sshfl [vmem:[#allocation2 + $0xbe] sm:$0x77 pattern:$0x75316420] }
 0x15e   :  { %v2530_v30 = vunpack.c.h.bf16 %v4509_v54  ;;  %v2465_v60 = vadd.f32 %v2464_v42, %v2438_v45  ;;  %v2459_v49 = vmul.f32 %v2411_v62, %v2343_v38  ;;  %v2460_v63 = vmul.f32 %v2415_v11, %v2344_v19  ;;  %v4579_v42 = vld [vmem:[#allocation5 + $0x30c] sm:$0x1] }
 0x15f   :  { %v2482_v17 = vadd.f32 %v2481_v61, %v2480_v50  ;;  %v2461_v15 = vmul.f32 %v2419_v48, %v2345_v53  ;;  %v2493_v57 = vsel %vm189_vm0, %v2455_v8, 0.0  ;;  %v2494_v33 = vsel %vm189_vm0, %v2456_v58, 0.0  ;;  %v4577_v50 = vld [vmem:[#allocation5 + $0x304] sm:$0x11] }
 0x160   :  { %v2496_v31 = vsel %vm189_vm0, %v2457_v9, 0.0  ;;  %v2466_v61 = vadd.f32 %v2465_v60, %v2439_v14  ;;  %v2495_v28 = vadd.f32 %v2494_v33, %v2493_v57  ;;  %v2531_v38 = vunpack.c.l.bf16 %v4546_v55  ;;  %v4607_v60 = vld [vmem:[#allocation5 + $0x174] sm:$0xff] }
 0x161   :  { %2483 = vadd.xlane.f32.xlu1 %v2482_v17  ;;  %v2532_v12 = vunpack.c.h.bf16 %v4546_v55  ;;  %v2498_v34 = vsel %vm189_vm0, %v2458_v37, 0.0  ;;  %v2448_v19 = vmul.f32 %v2395_v18, %v2332_v21  ;;  %v2449_v53 = vmul.f32 %v2399_v0, %v2333_v59  ;;  %v4586_v18 = vpop.xlane.xlu0 %568 }
 0x162   :  { %v2450_v32 = vmul.f32 %v2403_v44, %v2334_v13  ;;  %v2467_v45 = vadd.f32 %v2466_v61, %v2440_v41  ;;  %v2497_v14 = vadd.f32 %v2496_v31, %v2495_v28  ;;  %v2500_v35 = vsel %vm189_vm0, %v2459_v49, 0.0 }
 0x163   :  { %v2502_v56 = vsel %vm189_vm0, %v2460_v63, 0.0  ;;  %v2504_v21 = vsel %vm189_vm0, %v2461_v15, 0.0  ;;  %v2451_v24 = vmul.f32 %v2407_v29, %v2335_v40  ;;  %v2452_v59 = vmul.f32 %v2411_v62, %v2336_v52  ;;  %v4597_v29 = vpop.xlane.xlu1 %393 }
 0x164   :  { %v2485_v13 = vadd.f32 %v2449_v53, %v2448_v19  ;;  %2468 = vadd.xlane.f32.xlu0 %v2467_v45  ;;  %v2499_v41 = vadd.f32 %v2498_v34, %v2497_v14  ;;  %v2453_v0 = vmul.f32 %v2415_v11, %v2337_v46  ;;  %v2454_v44 = vmul.f32 %v2419_v48, %v2338_v39  ;;  %v4602_v39 = vld [vmem:[#allocation5 + $0x16c] sm:$0xff] }
 0x165   :  { %v2552_v8 = vcombine.low %v4562_v51, %v4573_v36  ;;  %v2533_v23 = vunpack.c.l.bf16 %v4577_v50  ;;  %v2534_v40 = vunpack.c.h.bf16 %v4577_v50  ;;  %v4773_v52 = vunpack.c.l.bf16 %v4579_v42  ;;  %v4619_v34 = vpop.xlane.xlu0 %591 }
 0x166   :  { %v2486_v58 = vadd.f32 %v2485_v13, %v2450_v32  ;;  %v2501_v62 = vadd.f32 %v2500_v35, %v2499_v41  ;;  %v2522_v28 = vunpack.c.l.bf16 %v4602_v39  ;;  %v4622_v32 = vld [vmem:[#allocation5 + $0x17c] sm:$0xff]  ;;  %v2523_v45 = vunpack.c.h.bf16 %v4602_v39 }
 0x167   :  { %v2557_v9 = vrot.slane %v2552_v8, %v3078_v2  ;;  %v2561_v25 = vrot.slane %v2552_v8, %v3081_v3  ;;  %v2565_v46 = vrot.slane %v2552_v8, %v3084_v4  ;;  %v2569_v48 = vrot.slane %v2552_v8, %v3087_v5  ;;  %v4630_v13 = vpop.xlane.xlu1 %416 }
 0x168   :  { %v2487_v11 = vadd.f32 %v2486_v58, %v2451_v24  ;;  %v2573_v37 = vrot.slane %v2552_v8, %v3090_v6  ;;  %v2577_v17 = vrot.slane %v2552_v8, %v3093_v10  ;;  %v2503_v49 = vadd.f32 %v2502_v56, %v2501_v62 }
 0x169   :  { %v2581_v63 = vrot.slane %v2552_v8, %v3096_v16  ;;  %v2631_v15 = vmul.f32 %v2557_v9, %v2529_v20  ;;  %v2632_v57 = vmul.f32 %v2561_v25, %v2530_v30  ;;  %v2633_v31 = vmul.f32 %v2565_v46, %v2531_v38 }
 0x16a   :  { %v2488_v33 = vadd.f32 %v2487_v11, %v2452_v59  ;;  %v2634_v61 = vmul.f32 %v2569_v48, %v2532_v12  ;;  %v2505_v19 = vadd.f32 %v2504_v21, %v2503_v49  ;;  %v2524_v14 = vunpack.c.l.bf16 %v4607_v60 }
 0x16b   :  { %v2660_v53 = vsel %vm189_vm0, %v2631_v15, 0.0  ;;  %v2635_v56 = vmul.f32 %v2573_v37, %v2533_v23  ;;  %v2661_v24 = vsel %vm189_vm0, %v2632_v57, 0.0  ;;  %v2663_v59 = vsel %vm189_vm0, %v2633_v31, 0.0 }
 0x16c   :  { %v2489_v35 = vadd.f32 %v2488_v33, %v2453_v0  ;;  %2506 = vadd.xlane.f32.xlu1 %v2505_v19  ;;  %v2636_v21 = vmul.f32 %v2577_v17, %v2534_v40  ;;  %v2637_v41 = vmul.f32 %v2581_v63, %v4773_v52  ;;  %v2662_v8 = vadd.f32 %v2661_v24, %v2660_v53 }
 0x16d   :  { %v2665_v0 = vsel %vm189_vm0, %v2634_v61, 0.0  ;;  %v2525_v62 = vunpack.c.h.bf16 %v4607_v60  ;;  %v2526_v11 = vunpack.c.l.bf16 %v4622_v32  ;;  %v2624_v15 = vmul.f32 %v2557_v9, %v2522_v28  ;;  %v4647_v61 = vpop.xlane.xlu0 %758 }
 0x16e   :  { %v2490_v58 = vadd.f32 %v2489_v35, %v2454_v44  ;;  %v2664_v49 = vadd.f32 %v2663_v59, %v2662_v8  ;;  %v2625_v57 = vmul.f32 %v2561_v25, %v2523_v45  ;;  %v2667_v33 = vsel %vm189_vm0, %v2635_v56, 0.0  ;;  %v584_v8 = vpop.xlane.xlu1 %583 }
 0x16f   :  { %v2527_v31 = vunpack.c.h.bf16 %v4622_v32  ;;  %v2626_v44 = vmul.f32 %v2565_v46, %v2524_v14  ;;  %v2627_v53 = vmul.f32 %v2569_v48, %v2525_v62  ;;  %v2553_v24 = vcombine.high %v4562_v51, %v4573_v36 }
 0x170   :  { %2491 = vadd.xlane.f32.xlu0 %v2490_v58  ;;  %v2666_v19 = vadd.f32 %v2665_v0, %v2664_v49  ;;  %v2652_v35 = vadd.f32 %v2625_v57, %v2624_v15  ;;  %v2669_v9 = vsel %vm189_vm0, %v2636_v21, 0.0  ;;  %v2671_v25 = vsel %vm189_vm0, %v2637_v41, 0.0 }
 0x171   :  { %v2528_v59 = vunpack.c.h.bf16 %v4498_v47  ;;  %v2628_v56 = vmul.f32 %v2573_v37, %v2526_v11  ;;  %v2585_v46 = vrot.slane %v2553_v24, %v3078_v2  ;;  %v2589_v52 = vrot.slane %v2553_v24, %v3081_v3 }
 0x172   :  { %v2668_v32 = vadd.f32 %v2667_v33, %v2666_v19  ;;  %v2653_v58 = vadd.f32 %v2652_v35, %v2626_v44  ;;  %v2629_v0 = vmul.f32 %v2577_v17, %v2527_v31  ;;  %v2593_v48 = vrot.slane %v2553_v24, %v3084_v4  ;;  %v204_v17 = vpop.xlane.xlu0 %203  ;;  %v4674_v44 = vpop.xlane.xlu1 %606 }
 0x173   :  { %v2597_v49 = vrot.slane %v2553_v24, %v3087_v5  ;;  %v2601_v51 = vrot.slane %v2553_v24, %v3090_v6  ;;  %v2605_v41 = vrot.slane %v2553_v24, %v3093_v10  ;;  %v2645_v47 = vmul.f32 %v2585_v46, %v2529_v20 }
 0x174   :  { %v2670_v36 = vadd.f32 %v2669_v9, %v2668_v32  ;;  %v2654_v21 = vadd.f32 %v2653_v58, %v2627_v53  ;;  %v2646_v37 = vmul.f32 %v2589_v52, %v2530_v30  ;;  %v2647_v15 = vmul.f32 %v2593_v48, %v2531_v38 }
 0x175   :  { %v2648_v4 = vmul.f32 %v2597_v49, %v2532_v12  ;;  %v2630_v57 = vmul.f32 %v2581_v63, %v2528_v59  ;;  %v2609_v33 = vrot.slane %v2553_v24, %v3096_v16  ;;  %v2649_v10 = vmul.f32 %v2601_v51, %v2533_v23 }
 0x176   :  { %v2672_v5 = vadd.f32 %v2671_v25, %v2670_v36  ;;  %v2655_v6 = vadd.f32 %v2654_v21, %v2628_v56  ;;  %v2683_v20 = vsel %vm189_vm0, %v2645_v47, 0.0  ;;  %v2684_v54 = vsel %vm189_vm0, %v2646_v37, 0.0  ;;  %v782_v47 = vpop.xlane.xlu0 %781 }
 0x177   :  { %v2686_v30 = vsel %vm189_vm0, %v2647_v15, 0.0  ;;  %v2650_v38 = vmul.f32 %v2605_v41, %v2534_v40  ;;  %v2685_v12 = vadd.f32 %v2684_v54, %v2683_v20  ;;  %v419_v63 = vadd.f32 %v4597_v29, %v204_v17 }
 0x178   :  { %2673 = vadd.xlane.f32.xlu1 %v2672_v5  ;;  %v2656_v55 = vadd.f32 %v2655_v6, %v2629_v0  ;;  %v2688_v16 = vsel %vm189_vm0, %v2648_v4, 0.0  ;;  %v2638_v23 = vmul.f32 %v2585_v46, %v2522_v28  ;;  %v2639_v19 = vmul.f32 %v2589_v52, %v2523_v45  ;;  %v774_v52 = vpop.xlane.xlu1 %773 }
 0x179   :  { %v2640_v53 = vmul.f32 %v2593_v48, %v2524_v14  ;;  %v2687_v24 = vadd.f32 %v2686_v30, %v2685_v12  ;;  %v4788_v9 = vunpack.c.l.bf16 %v4579_v42  ;;  %v2690_v40 = vsel %vm189_vm0, %v2649_v10, 0.0 }
 0x17a   :  { %v2657_v35 = vadd.f32 %v2656_v55, %v2630_v57  ;;  %v2641_v25 = vmul.f32 %v2597_v49, %v2525_v62  ;;  %v2675_v29 = vadd.f32 %v2639_v19, %v2638_v23  ;;  %v609_v32 = vadd.f32 %v584_v8, %v419_v63 }
 0x17b   :  { %v2651_v50 = vmul.f32 %v2609_v33, %v4788_v9  ;;  %v2689_v56 = vadd.f32 %v2688_v16, %v2687_v24  ;;  %v2692_v28 = vsel %vm189_vm0, %v2650_v38, 0.0  ;;  %v2642_v58 = vmul.f32 %v2601_v51, %v2526_v11  ;;  %v2926_v11 = vld [vmem:[%s4756_s2] ss:$0 sm:$0xff]  ;;  %s3022_s2 = smov [#allocation7]  }
 0x17c   :  { %2658 = vadd.xlane.f32.xlu0 %v2657_v35  ;;  %v2676_v39 = vadd.f32 %v2675_v29, %v2640_v53  ;;  %v4690_v60 = vadd.f32 %v774_v52, %v609_v32  ;;  %v2643_v46 = vmul.f32 %v2605_v41, %v2527_v31  ;;  %v2644_v48 = vmul.f32 %v2609_v33, %v2528_v59  ;;  %v797_v51 = vpop.xlane.xlu1 %796  ;;  %v949_v41 = vpop.xlane.xlu0 %948  ;;  %s2888_s11 = sshll.u32 %s3022_s2, 4  ;;  %s2889_s11 = int_to_ptr.vmem [resolvable:$true] %s2888_s11 }
 0x17d   :  { %v2691_v45 = vadd.f32 %v2690_v40, %v2689_v56  ;;  %v2694_v14 = vsel %vm189_vm0, %v2651_v50, 0.0  ;;  %v3021_v8 = vmov 0   ;;  %s2989_s12 = scalar_lea.vmem %s2889_s11, 32  ;;  %p2994_p3 = scmp.lt.s32.totalorder %s2889_s11, %s2889_s11 }
 0x17e   :  { %v2677_v42 = vadd.f32 %v2676_v39, %v2641_v25  ;;  %2934 = vset.pattern.permute.xlu0 %v3021_v8  ;;  %2933 = vset.pattern.permute.xlu1 %v3021_v8  ;;  %p2990_p2 = scmp.ne.s32.totalorder %s2889_s11, %s2989_s12  ;;  %p2995_p4 = scmp.lt.s32.totalorder %s2989_s12, %s2989_s12 }
 0x17f   :  { %v2693_v0 = vadd.f32 %v2692_v28, %v2691_v45  ;;  %v418_v28 = vadd.f32 %v4516_v43, %v4485_v26 }
 0x180   :  { %v2678_v36 = vadd.f32 %v2677_v42, %v2642_v58  ;;  %v964_v31 = vpop.xlane.xlu1 %963  ;;  %v972_v37 = vpop.xlane.xlu0 %971  ;;  %v420_v58 = vadd.f32 %v4549_v27, %v4529_v22  ;;  %p2996_p5 = por %p2995_p4, %p2994_p3 }
 0x181   :  { %v2695_v62 = vadd.f32 %v2694_v14, %v2693_v0  ;;  %v608_v39 = vadd.f32 %v4586_v18, %v418_v28  ;;  %v989_v27 = vadd.f32 %v964_v31, %v4690_v60 }
 0x182   :  { %v2679_v49 = vadd.f32 %v2678_v36, %v2643_v46  ;;  %v610_v52 = vadd.f32 %v4619_v34, %v420_v58  ;;  %v421_v36 = vadd.f32 %v4630_v13, %v4560_v7  ;;  %p2997_p6 = pnand %p2996_p5, %p2990_p2 }
 0x183   :  { %2696 = vadd.xlane.f32.xlu1 %v2695_v62  ;;  %v798_v46 = vadd.f32 %v4647_v61, %v608_v39 }
 0x184   :  { %v2680_v21 = vadd.f32 %v2679_v49, %v2644_v48  ;;  %v987_v59 = vpop.xlane.xlu1 %986  ;;  %v1139_v4 = vpop.xlane.xlu0 %1138  ;;  %v800_v42 = vadd.f32 %v782_v47, %v610_v52  ;;  %v611_v22 = vadd.f32 %v4674_v44, %v421_v36 }
 0x185   :  { %v988_v0 = vadd.f32 %v949_v41, %v798_v46 }
 0x186   :  { %2681 = vadd.xlane.f32.xlu0 %v2680_v21  ;;  %v990_v48 = vadd.f32 %v972_v37, %v800_v42  ;;  %v801_v21 = vadd.f32 %v797_v51, %v611_v22 }
 0x187   :  { %v1178_v62 = vadd.f32 %v1139_v4, %v988_v0 }
 0x188   :  { %v1154_v15 = vpop.xlane.xlu1 %1153  ;;  %v1162_v5 = vpop.xlane.xlu0 %1161  ;;  %v991_v47 = vadd.f32 %v987_v59, %v801_v21 }
 0x189   :  { %v1180_v49 = vadd.f32 %v1162_v5, %v990_v48 }
 0x18c   :  { %v1177_v17 = vpop.xlane.xlu1 %1176  ;;  %v1329_v6 = vpop.xlane.xlu0 %1328 }
 0x18d   :  { %v1368_v18 = vadd.f32 %v1329_v6, %v1178_v62  ;;  %v1181_v13 = vadd.f32 %v1177_v17, %v991_v47 }
 0x190   :  { %v1344_v57 = vpop.xlane.xlu1 %1343  ;;  %v1352_v10 = vpop.xlane.xlu0 %1351 }
 0x191   :  { %v1370_v34 = vadd.f32 %v1352_v10, %v1180_v49 }
 0x194   :  { %2713 = vbcast.lane.b32.xlu1 %v2926_v11, 264  ;;  %v1367_v33 = vpop.xlane.xlu1 %1366  ;;  %v1519_v54 = vpop.xlane.xlu0 %1518 }
 0x195   :  { %v1558_v8 = vadd.f32 %v1519_v54, %v1368_v18  ;;  %v1371_v52 = vadd.f32 %v1367_v33, %v1181_v13 }
 0x198   :  { %v1534_v20 = vpop.xlane.xlu1 %1533  ;;  %v1542_v55 = vpop.xlane.xlu0 %1541 }
 0x199   :  { %v1560_v61 = vadd.f32 %v1542_v55, %v1370_v34 }
 0x19c   :  { %2709 = vbcast.lane.b32.xlu0 %v2926_v11, 256  ;;  %v1557_v30 = vpop.xlane.xlu1 %1556  ;;  %v1709_v12 = vpop.xlane.xlu0 %1708  ;;  %v1179_v11 = vadd.f32 %v1154_v15, %v989_v27 }
 0x19d   :  { %v1748_v37 = vadd.f32 %v1709_v12, %v1558_v8  ;;  %v1561_v31 = vadd.f32 %v1557_v30, %v1371_v52 }
 0x19e   :  { %v1369_v41 = vadd.f32 %v1344_v57, %v1179_v11 }
 0x1a0   :  { %v1724_v38 = vpop.xlane.xlu1 %1723  ;;  %v1732_v16 = vpop.xlane.xlu0 %1731  ;;  %v1559_v4 = vadd.f32 %v1534_v20, %v1369_v41 }
 0x1a1   :  { %v1750_v28 = vadd.f32 %v1732_v16, %v1560_v61 }
 0x1a2   :  { %v1749_v44 = vadd.f32 %v1724_v38, %v1559_v4 }
 0x1a4   :  { %v1747_v63 = vpop.xlane.xlu1 %1746 }
 0x1a5   :  { %v1751_v59 = vadd.f32 %v1747_v63, %v1561_v31 }
 0x1a8   :  { %v1914_v23 = vpop.xlane.xlu1 %1913 }
 0x1a9   :  { %v1939_v6 = vadd.f32 %v1914_v23, %v1749_v44 }
 0x1aa   :  { %v1899_v19 = vpop.xlane.xlu0 %1898 }
 0x1ab   :  { %v1938_v5 = vadd.f32 %v1899_v19, %v1748_v37 }
 0x1b2   :  { %v1937_v53 = vpop.xlane.xlu1 %1936 }
 0x1b3   :  { %v1941_v16 = vadd.f32 %v1937_v53, %v1751_v59  ;;  %v4789_v53 = vlaneseq }
 0x1b5   :  { %v1922_v35 = vpop.xlane.xlu0 %1921 }
 0x1b6   :  { %v1940_v39 = vadd.f32 %v1922_v35, %v1750_v28 }
 0x1be   :  { %v2104_v24 = vpop.xlane.xlu1 %2103 }
 0x1bf   :  { %v2129_v57 = vadd.f32 %v2104_v24, %v1939_v6 }
 0x1c2   :  { %v2089_v9 = vpop.xlane.xlu0 %2088 }
 0x1c3   :  { %v2128_v46 = vadd.f32 %v2089_v9, %v1938_v5 }
 0x1ca   :  { %v2127_v50 = vpop.xlane.xlu1 %2126 }
 0x1cb   :  { %v2131_v35 = vadd.f32 %v2127_v50, %v1941_v16 }
 0x1cd   :  { %v2112_v40 = vpop.xlane.xlu0 %2111 }
 0x1ce   :  { %v2130_v60 = vadd.f32 %v2112_v40, %v1940_v39 }
 0x1d6   :  { %v2294_v25 = vpop.xlane.xlu1 %2293 }
 0x1d7   :  { %v2319_v42 = vadd.f32 %v2294_v25, %v2129_v57  ;;  %v2738_v25 = vand.u32 127, %v4789_v53 }
 0x1d9   :  { %v4712_v48 = vsub.s32 %v2738_v25, %v3075_v1 }
 0x1da   :  { %v2279_v29 = vpop.xlane.xlu0 %2278 }
 0x1db   :  { %v2318_v51 = vadd.f32 %v2279_v29, %v2128_v46 }
 0x1e2   :  { %v2317_v56 = vpop.xlane.xlu1 %2316 }
 0x1e3   :  { %v2321_v30 = vadd.f32 %v2317_v56, %v2131_v35 }
 0x1e5   :  { %v2302_v32 = vpop.xlane.xlu0 %2301 }
 0x1e6   :  { %v2320_v15 = vadd.f32 %v2302_v32, %v2130_v60 }
 0x1ee   :  { %v2484_v45 = vpop.xlane.xlu1 %2483 }
 0x1ef   :  { %v2509_v33 = vadd.f32 %v2484_v45, %v2319_v42 }
 0x1f1   :  { %v2469_v14 = vpop.xlane.xlu0 %2468 }
 0x1f2   :  { %v2508_v55 = vadd.f32 %v2469_v14, %v2318_v51  ;;  %v2743_v14 = vadd.s32 4294967288, %v2738_v25 }
 0x1f4   :  { %v4709_v50 = vsub.s32 %v2743_v14, %v3075_v1 }
 0x1f9   :  { %v2507_v26 = vpop.xlane.xlu1 %2506 }
 0x1fa   :  { %v2511_v29 = vadd.f32 %v2507_v26, %v2321_v30 }
 0x1fd   :  { %v2492_v43 = vpop.xlane.xlu0 %2491 }
 0x1fe   :  { %v2510_v12 = vadd.f32 %v2492_v43, %v2320_v15 }
 0x205   :  { %v2674_v58 = vpop.xlane.xlu1 %2673 }
 0x206   :  { %v2699_v23 = vadd.f32 %v2674_v58, %v2509_v33 }
 0x209   :  { %v2659_v7 = vpop.xlane.xlu0 %2658 }
 0x20a   :  { %v2698_v17 = vadd.f32 %v2659_v7, %v2508_v55 }
 0x210   :  { %v2697_v10 = vpop.xlane.xlu1 %2696 }
 0x211   :  { %v2701_v63 = vadd.f32 %v2697_v10, %v2511_v29 }
 0x213   :  { %v2682_v54 = vpop.xlane.xlu0 %2681 }
 0x214   :  { %v2700_v20 = vadd.f32 %v2682_v54, %v2510_v12  ;;  %v2714_v40 = vpop.permute.xlu1 %2713 }
 0x215   :  { %v2718_v32 = vadd.f32 %v2714_v40, %v2699_v23  ;;  %v2720_v24 = vadd.f32 %v2714_v40, %v2701_v63 }
 0x217   :  { %v2710_v19 = vpop.permute.xlu0 %2709 }
 0x218   :  { %v2717_v38 = vadd.f32 %v2710_v19, %v2698_v17  ;;  %v2719_v9 = vadd.f32 %v2710_v19, %v2700_v20 }
 0x21a   :  { %2732 = vperm.xlu0 %2934, %v2719_v9   ;;  %2726 = vperm.xlu1 %2933, %v2717_v38  }
 0x21e   :  { %2729 = vperm.xlu1 %2933, %v2718_v32  }
 0x222   :  { %2735 = vperm.xlu1 %2933, %v2720_v24  }
 0x299   :  { %v2727_v0 = vpop.permute.xlu1 %2726  ;;  %v2733_v56 = vpop.permute.xlu0 %2732 }
 0x29a   :  { %v2753_v49 = vrot.slane %v2733_v56, %v4712_v48  ;;  %v2742_v26 = vrot.slane %v2727_v0, %v4712_v48 }
 0x29d   :  { %v2730_v45 = vpop.permute.xlu1 %2729 }
 0x29e   :  { %v2747_v36 = vrot.slane %v2730_v45, %v4709_v50 }
 0x2a0   :  { %v2749_v22 = vsel %vm2748_vm1, %v2747_v36, %v2742_v26 }
 0x2a1   :  { %v2736_v62 = vpop.permute.xlu1 %2735 }
 0x2a2   :  { %v2757_v43 = vrot.slane %v2736_v62, %v4709_v50 }
 0x2a4   :  { %v2758_v27 = vsel %vm2748_vm1, %v2757_v43, %v2753_v49 }
 0x2a5   :  { %v2760_v1 = vsel %vm2759_vm2, %v2758_v27, %v2749_v22 }
 0x2a6   :  { %v2763_v18 = vsel %vm2762_vm3, %v2760_v1, -inf }
 0x2a7   :  { %2764 = vmax.xlane.f32.xlu1 %v2763_v18 }
 0x334   :  { %v2765_v34 = vpop.xlane.xlu1 %2764 }
 0x335   :  { %v2770_v21 = vrot.slane %v2765_v34, %v3078_v2  ;;  %v2774_v11 = vrot.slane %v2765_v34, %v3081_v3 }
 0x337   :  { %v2777_v8 = vsub.f32 %v2717_v38, %v2770_v21  ;;  %v2778_v61 = vsub.f32 %v2718_v32, %v2770_v21  ;;  %v2779_v41 = vsub.f32 %v2719_v9, %v2774_v11  ;;  %v2780_v28 = vsub.f32 %v2720_v24, %v2774_v11 }
 0x339   :  { %v2781_v47 = vmul.f32 1.442695, %v2777_v8  ;;  %v2783_v37 = vmul.f32 1.442695, %v2778_v61  ;;  %v2785_v58 = vmul.f32 1.442695, %v2779_v41 }
 0x33a   :  { %v2787_v7 = vmul.f32 1.442695, %v2780_v28 }
 0x33b   :  { %2935 = vpow2.f32 %v2781_v47 }
 0x33c   :  { %2937 = vpow2.f32 %v2783_v37 }
 0x33d   :  { %2939 = vpow2.f32 %v2785_v58 }
 0x33e   :  { %2941 = vpow2.f32 %v2787_v7 }
 0x345   :  { %v2936_v13 = vpop.eup %2935 }
 0x346   :  { %2794 = vperm.xlu0 %2934, %v2936_v13   ;;  %v2938_v4 = vpop.eup %2937 }
 0x347   :  { %v2940_v5 = vpop.eup %2939 }
 0x348   :  { %v2942_v39 = vpop.eup %2941 }
 0x34a   :  { %2797 = vperm.xlu0 %2934, %v2938_v4  }
 0x34e   :  { %2800 = vperm.xlu0 %2934, %v2940_v5  }
 0x352   :  { %2803 = vperm.xlu0 %2934, %v2942_v39  }
 0x3c5   :  { %v2795_v52 = vpop.permute.xlu0 %2794 }
 0x3c6   :  { %v2808_v6 = vrot.slane %v2795_v52, %v4712_v48 }
 0x3c9   :  { %v2798_v44 = vpop.permute.xlu0 %2797 }
 0x3ca   :  { %v2812_v60 = vrot.slane %v2798_v44, %v4709_v50 }
 0x3cc   :  { %v2813_v10 = vsel %vm2748_vm1, %v2812_v60, %v2808_v6 }
 0x3cd   :  { %v2801_v46 = vpop.permute.xlu0 %2800 }
 0x3ce   :  { %v2817_v51 = vrot.slane %v2801_v46, %v4712_v48 }
 0x3d1   :  { %v2804_v31 = vpop.permute.xlu0 %2803 }
 0x3d2   :  { %v2821_v15 = vrot.slane %v2804_v31, %v4709_v50 }
 0x3d4   :  { %v2822_v54 = vsel %vm2748_vm1, %v2821_v15, %v2817_v51 }
 0x3d5   :  { %v2823_v59 = vsel %vm2759_vm2, %v2822_v54, %v2813_v10 }
 0x3d6   :  { %v2825_v57 = vsel %vm2762_vm3, %v2823_v59, 0.0 }
 0x3d7   :  { %2826 = vadd.xlane.f32.xlu0 %v2825_v57 }
 0x464   :  { %v2827_v55 = vpop.xlane.xlu0 %2826 }
 0x465   :  { %2943 = vlog2.f32 %v2827_v55 }
 0x46f   :  { %v2944_v12 = vpop.eup %2943 }
 0x470   :  { %v2829_v16 = vmul.f32 0.6931472, %v2944_v12 }
 0x472   :  { %v2834_v42 = vrot.slane %v2829_v16, %v3078_v2  ;;  %v2838_v17 = vrot.slane %v2829_v16, %v3081_v3 }
 0x474   :  { %v2842_v20 = vsub.f32 %v2778_v61, %v2834_v42  ;;  %v2841_v19 = vsub.f32 %v2777_v8, %v2834_v42  ;;  %v2843_v35 = vsub.f32 %v2779_v41, %v2838_v17  ;;  %v2844_v33 = vsub.f32 %v2780_v28, %v2838_v17 }
 0x476   :  { %2853 = vperm.xlu0 %2934, %v2842_v20   ;;  %2850 = vperm.xlu1 %2933, %v2841_v19  }
 0x47a   :  { %2856 = vperm.xlu1 %2933, %v2843_v35  }
 0x47e   :  { %2859 = vperm.xlu1 %2933, %v2844_v33  }
 0x4f5   :  { %v2851_v38 = vpop.permute.xlu1 %2850  ;;  %v2854_v9 = vpop.permute.xlu0 %2853 }
 0x4f6   :  { %v2868_v30 = vrot.slane %v2854_v9, %v4709_v50  ;;  %v2864_v23 = vrot.slane %v2851_v38, %v4712_v48 }
 0x4f8   :  { %v2869_v32 = vsel %vm2748_vm1, %v2868_v30, %v2864_v23 }
 0x4f9   :  { %v2857_v40 = vpop.permute.xlu1 %2856 }
 0x4fa   :  { %v2873_v2 = vrot.slane %v2857_v40, %v4712_v48 }
 0x4fd   :  { %v2860_v29 = vpop.permute.xlu1 %2859 }
 0x4fe   :  { %v2877_v3 = vrot.slane %v2860_v29, %v4709_v50 }
 0x500   :  { %v2878_v63 = vsel %vm2748_vm1, %v2877_v3, %v2873_v2 }
 0x501   :  { %v2879_v24 = vsel %vm2759_vm2, %v2878_v63, %v2869_v32 }
 0x502   :  { %2881 = vst.msk [vmem:[#allocation7] sm:$0x3] %vm2762_vm3, %v2879_v24 }
 0x503   :  { %3000 = shalt.err (!%p2997_p6)
}
 0x504   :  { %s3001_s15 = scalar_lea.hbm %s4757_s3, 32 }
 0x505   :  { %p3002_p7 = scmp.ne.s32.totalorder %s4757_s3, %s3001_s15  ;;  %p3005_p8 = scmp.lt.u32.totalorder %s3001_s15, %s4757_s3 }
 0x507   :  { %p3007_p9 = pnand %p3005_p8, %p3002_p7 }
 0x509   :  { %3010 = shalt.err (!%p3007_p9)
}
 0x50a   :  { %2891 = dma.vmem_to_hbm [thread:$0]  %s2889_s11, 32, %s4757_s3, [#allocation4]  }
 0x50b   :  { %3015 = dma.done.wait [#allocation4], 32  }
 0x50c   :  { %3016 = vsyncadd [#allocation4], 4294967264 }
 0x50d   :  { %2895 = vsyncpa [#allocation3], 1 }
 0x50e   :  { %2896 = vsyncpa [#allocation6], 1 }
 0x50f   :  { %2897 = vsyncpa [#allocation4], 1 }

</bundles_post_ra>
